<compile_context>
chip_gen: v7x
topology: tpu7x:2x2x1
jax: 0.10.0
libtpu: 0.0.40
codegen_flags: <defaults>
</compile_context>

<pallas_src>
import functools

import jax
import jax.numpy as jnp
import numpy as np
from jax.experimental import pallas as pl
from jax.experimental.pallas import tpu as pltpu


# ----------------------------------------------------------------------------- fused kernel

def _basic_block_kernel(x_ref, mask_ref,
                        w_g1pw_ref, b_g1pw_ref, w_g1dw_ref, b_g1dw_ref,
                        w_br_ref, b_br_ref,
                        w_g2pw_ref, b_g2pw_ref, w_g2dw_ref, b_g2dw_ref,
                        wm_ref, bm_ref, wa1_ref, ba1_ref, gln_ref, bln_ref,
                        wa2_ref, ba2_ref,
                        o_ref, *, H, W, init_c, eps):
    HW = H * W
    x = x_ref[0]                                           # (C, HW) channel-major, f32

    # 9 boundary masks (one per 3x3 tap), each (1, HW)
    mask_rows = [mask_ref[t:t + 1, :] for t in range(9)]

    def taps(a):
        """All 9 taps of a zero-padded 3x3 window over the flattened spatial (lane) axis."""
        out = []
        for dy in range(3):
            for dx in range(3):
                t = dy * 3 + dx
                off = (dy - 1) * W + (dx - 1)
                if off == 0:
                    out.append(a)                          # center tap: no shift, full mask
                else:
                    out.append(pltpu.roll(a, shift=(-off) % HW, axis=1) * mask_rows[t])
        return out

    def dw3x3(a, w_ref_, b_ref_, relu):
        """Depthwise 3x3 conv (pad=1) + bias (+ReLU); per-channel weights are columns of (C, 9)."""
        ts = taps(a)
        acc = ts[0] * w_ref_[:, 0:1]
        for t in range(1, 9):
            acc = acc + ts[t] * w_ref_[:, t:t + 1]
        acc = acc + b_ref_[...]
        if relu:
            acc = jnp.maximum(acc, 0.0)
        return acc

    def ghost(a_in, w_pw_ref, b_pw_ref, w_dw_ref, b_dw_ref, relu):
        """GhostModule: 1x1 conv half + depthwise-3x3 half, assembled without a concat."""
        # primary 1x1 conv (+folded BN [+ReLU]); weight/bias rows [init_c:C] are zero
        prim = jnp.dot(w_pw_ref[...], a_in, preferred_element_type=jnp.float32) + b_pw_ref[...]
        if relu:
            prim = jnp.maximum(prim, 0.0)
        # cheap depthwise 3x3 of the primary half; rows [init_c:C] come out exactly zero
        cheap = dw3x3(prim, w_dw_ref, b_dw_ref, relu)
        # concat([primary, cheap], channel)[:C]  ==  primary + roll(cheap, init_c, sublane axis)
        return prim + pltpu.roll(cheap, shift=init_c, axis=0)

    # ---- ghost1 (relu=True) ----
    g1 = ghost(x, w_g1pw_ref, b_g1pw_ref, w_g1dw_ref, b_g1dw_ref, relu=True)

    # ---- Branch (RepVGG training form reparameterised; SE == identity): one im2col matmul ----
    big = jnp.concatenate(taps(g1), axis=0)                 # (9*C, HW), 8-row aligned chunks
    br = jnp.dot(w_br_ref[...], big, preferred_element_type=jnp.float32) + b_br_ref[...]
    br = jnp.maximum(br, 0.0)

    # ---- ghost2 (relu=False) ----
    g2 = ghost(br, w_g2pw_ref, b_g2pw_ref, w_g2dw_ref, b_g2dw_ref, relu=False)

    # ---- GlobalContextBlock (att pooling + channel_add) + residual add + final ReLU ----
    logits = jnp.sum(g2 * wm_ref[...], axis=0, keepdims=True) + bm_ref[...]      # (1, HW)
    m = jnp.max(logits, axis=-1, keepdims=True)
    e = jnp.exp(logits - m)
    attn = e / jnp.sum(e, axis=-1, keepdims=True)                                 # softmax over HW
    context = jnp.sum(g2 * attn, axis=-1, keepdims=True)                          # (C, 1)
    h = jnp.sum(wa1_ref[...] * context, axis=0, keepdims=True) + ba1_ref[...]     # (1, planes)
    mu = jnp.mean(h, axis=-1, keepdims=True)
    var = jnp.mean(jnp.square(h - mu), axis=-1, keepdims=True)
    h = (h - mu) * jax.lax.rsqrt(var + eps) * gln_ref[...] + bln_ref[...]          # LayerNorm
    h = jnp.maximum(h, 0.0)
    add = jnp.sum(wa2_ref[...] * h, axis=-1, keepdims=True) + ba2_ref[...]        # (C, 1)

    o_ref[0] = jnp.maximum(g2 + add + x, 0.0).astype(o_ref.dtype)                 # +identity, ReLU


# ----------------------------------------------------------------------------- host-side prep

def _prepare(P, C, H, W):
    """Fold BN scales into conv weights, reparameterise the RepVGG branch, build tap masks."""
    f32 = jnp.float32
    init_c = (C + 1) // 2
    assert 2 * init_c == C, "fused kernel assumes an even channel count"
    HW = H * W

    def pad_rows(a):
        return jnp.zeros((C,) + a.shape[1:], f32).at[: a.shape[0]].set(a.astype(f32))

    def ghost_params(pw_w, pw_s, pw_b, dw_w, dw_s, dw_b):
        w_pw = pad_rows(pw_w[:, :, 0, 0] * pw_s[:, None])                 # (C, C)
        b_pw = pad_rows(pw_b[:, None])                                    # (C, 1)
        w_dw = pad_rows(dw_w[:, 0].reshape(init_c, 9) * dw_s[:, None])    # (C, 9)
        b_dw = pad_rows(dw_b[:, None])                                    # (C, 1)
        return w_pw, b_pw, w_dw, b_dw

    g1 = ghost_params(P['g1_pw_w'], P['g1_pw_s'], P['g1_pw_b'],
                      P['g1_dw_w'], P['g1_dw_s'], P['g1_dw_b'])
    g2 = ghost_params(P['g2_pw_w'], P['g2_pw_s'], P['g2_pw_b'],
                      P['g2_dw_w'], P['g2_dw_s'], P['g2_dw_b'])

    # RepVGG branch -> equivalent single 3x3 conv (exact eval-mode BN fold)
    w3f = P['br_w3'] * P['br_s3'][:, None, None, None]                    # (C, C, 3, 3)
    w_br = jnp.transpose(w3f, (0, 2, 3, 1)).reshape(C, 9 * C)             # [o, tap*C + i]
    w1f = P['br_w1'][:, :, 0, 0] * P['br_s1'][:, None] + jnp.diag(P['br_sid'])
    w_br = w_br.at[:, 4 * C:5 * C].add(w1f).astype(f32)                   # add at center tap
    b_br = (P['br_b3'] + P['br_b1'] + P['br_bid'])[:, None].astype(f32)   # (C, 1)

    # GCB weights in channel-major friendly shapes
    planes = P['gcb_wa1'].shape[0]
    wm = P['gcb_wm'][0, :, 0, 0][:, None].astype(f32)                     # (C, 1)
    bm = P['gcb_bm'].reshape(1, 1).astype(f32)
    wa1 = jnp.transpose(P['gcb_wa1'][:, :, 0, 0]).astype(f32)             # (C, planes)
    ba1 = P['gcb_ba1'].reshape(1, planes).astype(f32)
    gln = P['gcb_g_ln'].reshape(1, planes).astype(f32)
    bln = P['gcb_b_ln'].reshape(1, planes).astype(f32)
    wa2 = P['gcb_wa2'][:, :, 0, 0].astype(f32)                            # (C, planes)
    ba2 = P['gcb_ba2'][:, None].astype(f32)                               # (C, 1)

    # boundary masks for the 9 taps of a zero-padded 3x3 conv over the flattened H*W axis
    pos = jnp.arange(HW, dtype=jnp.int32)
    yc, xc = pos // W, pos % W
    masks = jnp.stack(
        [((yc + dy - 1 >= 0) & (yc + dy - 1 < H) & (xc + dx - 1 >= 0) & (xc + dx - 1 < W))
         for dy in range(3) for dx in range(3)], axis=0).astype(f32)      # (9, HW)

    return (masks, *g1, w_br, b_br, *g2, wm, bm, wa1, ba1, gln, bln, wa2, ba2)


def basic_block_forward(x_nchw, P):
    """BasicBlock.forward (in_channel == out_channel, stride=1, downsample=None). NCHW in/out."""
    B, C, H, W = x_nchw.shape
    HW = H * W
    init_c = (C + 1) // 2
    operands = _prepare(P, C, H, W)
    x_cm = x_nchw.reshape(B, C, HW).astype(jnp.float32)     # NCHW -> channel-major (free reshape)

    out = pl.pallas_call(
        functools.partial(_basic_block_kernel, H=H, W=W, init_c=init_c, eps=1e-5),
        out_shape=jax.ShapeDtypeStruct((B, C, HW), jnp.float32),
        grid_spec=pltpu.PrefetchScalarGridSpec(
            num_scalar_prefetch=0,
            grid=(B,),
            in_specs=[pl.BlockSpec((1, C, HW), lambda b: (b, 0, 0))]
                     + [pl.BlockSpec(op.shape, lambda b: (0, 0)) for op in operands],
            out_specs=pl.BlockSpec((1, C, HW), lambda b: (b, 0, 0))),
        compiler_params=pltpu.CompilerParams(dimension_semantics=("parallel",)),
    )(x_cm, *operands)
    return out.reshape(B, C, H, W)


# ----------------------------------------------------------------------------- reference (pure JAX)

def _conv(x, w_oihw, padding, groups=1):
    w = jnp.transpose(w_oihw, (2, 3, 1, 0))
    return jax.lax.conv_general_dilated(
        x, w, (1, 1), [(padding, padding), (padding, padding)],
        dimension_numbers=('NHWC', 'HWIO', 'NHWC'), feature_group_count=groups)


def ref_forward(x_nchw, P):
    x = jnp.transpose(x_nchw, (0, 2, 3, 1)).astype(jnp.float32)
    identity = x
    C = x.shape[-1]
    a = jnp.maximum(_conv(x, P['g1_pw_w'], 0) * P['g1_pw_s'] + P['g1_pw_b'], 0.0)
    b = jnp.maximum(_conv(a, P['g1_dw_w'], 1, groups=a.shape[-1]) * P['g1_dw_s'] + P['g1_dw_b'], 0.0)
    g1 = jnp.concatenate([a, b], -1)[..., :C]
    d = _conv(g1, P['br_w3'], 1) * P['br_s3'] + P['br_b3']
    o = _conv(g1, P['br_w1'], 0) * P['br_s1'] + P['br_b1']
    i = g1 * P['br_sid'] + P['br_bid']
    br = jnp.maximum(d + o + i, 0.0)
    a2 = _conv(br, P['g2_pw_w'], 0) * P['g2_pw_s'] + P['g2_pw_b']
    b2 = _conv(a2, P['g2_dw_w'], 1, groups=a2.shape[-1]) * P['g2_dw_s'] + P['g2_dw_b']
    g2 = jnp.concatenate([a2, b2], -1)[..., :C]
    B, H, W, Cc = g2.shape
    xf = g2.reshape(B, H * W, Cc)
    logits = jnp.einsum('bnc,c->bn', xf, P['gcb_wm'][0, :, 0, 0]) + P['gcb_bm']
    attn = jax.nn.softmax(logits, axis=1)
    ctx = jnp.einsum('bnc,bn->bc', xf, attn)
    h = ctx @ jnp.transpose(P['gcb_wa1'][:, :, 0, 0]) + P['gcb_ba1']
    mu = h.mean(-1, keepdims=True)
    var = ((h - mu) ** 2).mean(-1, keepdims=True)
    h = (h - mu) / jnp.sqrt(var + 1e-5) * P['gcb_g_ln'] + P['gcb_b_ln']
    h = jnp.maximum(h, 0.0)
    add = h @ jnp.transpose(P['gcb_wa2'][:, :, 0, 0]) + P['gcb_ba2']
    out = jnp.maximum(g2 + add[:, None, None, :] + identity, 0.0)
    return jnp.transpose(out, (0, 3, 1, 2))


# ----------------------------------------------------------------------------- params

def make_params(key, C):
    init_c = (C + 1) // 2                    # GhostModule: ceil(oup / ratio), ratio=2
    planes = int(C * 0.25)                   # GCB planes
    ks = iter(jax.random.split(key, 64))

    def w(shape, scale=0.2):
        return (scale * jax.random.normal(next(ks), shape)).astype(jnp.float32)

    def bn_fold(c):
        gamma = 1.0 + 0.1 * jax.random.normal(next(ks), (c,))
        beta = 0.1 * jax.random.normal(next(ks), (c,))
        mean = 0.1 * jax.random.normal(next(ks), (c,))
        var = 0.5 + jax.random.uniform(next(ks), (c,))
        s = gamma / jnp.sqrt(var + 1e-5)
        return s.astype(jnp.float32), (beta - mean * s).astype(jnp.float32)

    P = {}
    P['g1_pw_w'] = w((init_c, C, 1, 1)); P['g1_pw_s'], P['g1_pw_b'] = bn_fold(init_c)
    P['g1_dw_w'] = w((init_c, 1, 3, 3)); P['g1_dw_s'], P['g1_dw_b'] = bn_fold(init_c)
    P['br_w3'] = w((C, C, 3, 3));        P['br_s3'], P['br_b3'] = bn_fold(C)
    P['br_w1'] = w((C, C, 1, 1));        P['br_s1'], P['br_b1'] = bn_fold(C)
    P['br_sid'], P['br_bid'] = bn_fold(C)
    P['g2_pw_w'] = w((init_c, C, 1, 1)); P['g2_pw_s'], P['g2_pw_b'] = bn_fold(init_c)
    P['g2_dw_w'] = w((init_c, 1, 3, 3)); P['g2_dw_s'], P['g2_dw_b'] = bn_fold(init_c)
    P['gcb_wm'] = w((1, C, 1, 1));       P['gcb_bm'] = w((1,))
    P['gcb_wa1'] = w((planes, C, 1, 1)); P['gcb_ba1'] = w((planes,))
    P['gcb_g_ln'] = (1.0 + 0.1 * jax.random.normal(next(ks), (planes,))).astype(jnp.float32)
    P['gcb_b_ln'] = (0.1 * jax.random.normal(next(ks), (planes,))).astype(jnp.float32)
    P['gcb_wa2'] = w((C, planes, 1, 1)); P['gcb_ba2'] = w((C,))
    return P


# ----------------------------------------------------------------------------- main

if __name__ == "__main__":
    key = jax.random.PRNGKey(0)
    kx, kp = jax.random.split(key)
    B, C, H, W = 2, 8, 16, 16                 # in_channel == out_channel, stride=1, downsample=None
    x = jax.random.normal(kx, (B, C, H, W), dtype=jnp.float32)
    P = make_params(kp, C)

    out = basic_block_forward(x, P)
    out = jax.block_until_ready(out)
    assert out.shape == (B, C, H, W)

    ref = jax.block_until_ready(ref_forward(x, P))
    np.testing.assert_allclose(np.asarray(out), np.asarray(ref), rtol=5e-3, atol=5e-3)

    print("KERNEL_OK")
</pallas_src>

<mosaic_0001>
module attributes {stable_mosaic.version = 11 : i64} {
  func.func @_basic_block_kernel(%arg0: i32, %arg1: memref<1x8x256xf32, #tpu.memory_space<vmem>>, %arg2: memref<9x256xf32, #tpu.memory_space<vmem>>, %arg3: memref<8x8xf32, #tpu.memory_space<vmem>>, %arg4: memref<8x1xf32, #tpu.memory_space<vmem>>, %arg5: memref<8x9xf32, #tpu.memory_space<vmem>>, %arg6: memref<8x1xf32, #tpu.memory_space<vmem>>, %arg7: memref<8x72xf32, #tpu.memory_space<vmem>>, %arg8: memref<8x1xf32, #tpu.memory_space<vmem>>, %arg9: memref<8x8xf32, #tpu.memory_space<vmem>>, %arg10: memref<8x1xf32, #tpu.memory_space<vmem>>, %arg11: memref<8x9xf32, #tpu.memory_space<vmem>>, %arg12: memref<8x1xf32, #tpu.memory_space<vmem>>, %arg13: memref<8x1xf32, #tpu.memory_space<vmem>>, %arg14: memref<1x1xf32, #tpu.memory_space<vmem>>, %arg15: memref<8x2xf32, #tpu.memory_space<vmem>>, %arg16: memref<1x2xf32, #tpu.memory_space<vmem>>, %arg17: memref<1x2xf32, #tpu.memory_space<vmem>>, %arg18: memref<1x2xf32, #tpu.memory_space<vmem>>, %arg19: memref<8x2xf32, #tpu.memory_space<vmem>>, %arg20: memref<8x1xf32, #tpu.memory_space<vmem>>, %arg21: memref<1x8x256xf32, #tpu.memory_space<vmem>>) attributes {dimension_semantics = [#tpu.dimension_semantics<parallel>], iteration_bounds = array<i64: 2>, scalar_prefetch = 0 : i64, scratch_operands = 0 : i64, tpu.core_type = #tpu.core_type<tc>, window_params = [{transform_indices = @transform_0, window_bounds = array<i64: 1, 8, 256>}, {pipeline_mode = #tpu.pipeline_mode<synchronous>, transform_indices = @transform_1, window_bounds = array<i64: 9, 256>}, {pipeline_mode = #tpu.pipeline_mode<synchronous>, transform_indices = @transform_2, window_bounds = array<i64: 8, 8>}, {pipeline_mode = #tpu.pipeline_mode<synchronous>, transform_indices = @transform_3, window_bounds = array<i64: 8, 1>}, {pipeline_mode = #tpu.pipeline_mode<synchronous>, transform_indices = @transform_4, window_bounds = array<i64: 8, 9>}, {pipeline_mode = #tpu.pipeline_mode<synchronous>, transform_indices = @transform_5, window_bounds = array<i64: 8, 1>}, {pipeline_mode = #tpu.pipeline_mode<synchronous>, transform_indices = @transform_6, window_bounds = array<i64: 8, 72>}, {pipeline_mode = #tpu.pipeline_mode<synchronous>, transform_indices = @transform_7, window_bounds = array<i64: 8, 1>}, {pipeline_mode = #tpu.pipeline_mode<synchronous>, transform_indices = @transform_8, window_bounds = array<i64: 8, 8>}, {pipeline_mode = #tpu.pipeline_mode<synchronous>, transform_indices = @transform_9, window_bounds = array<i64: 8, 1>}, {pipeline_mode = #tpu.pipeline_mode<synchronous>, transform_indices = @transform_10, window_bounds = array<i64: 8, 9>}, {pipeline_mode = #tpu.pipeline_mode<synchronous>, transform_indices = @transform_11, window_bounds = array<i64: 8, 1>}, {pipeline_mode = #tpu.pipeline_mode<synchronous>, transform_indices = @transform_12, window_bounds = array<i64: 8, 1>}, {pipeline_mode = #tpu.pipeline_mode<synchronous>, transform_indices = @transform_13, window_bounds = array<i64: 1, 1>}, {pipeline_mode = #tpu.pipeline_mode<synchronous>, transform_indices = @transform_14, window_bounds = array<i64: 8, 2>}, {pipeline_mode = #tpu.pipeline_mode<synchronous>, transform_indices = @transform_15, window_bounds = array<i64: 1, 2>}, {pipeline_mode = #tpu.pipeline_mode<synchronous>, transform_indices = @transform_16, window_bounds = array<i64: 1, 2>}, {pipeline_mode = #tpu.pipeline_mode<synchronous>, transform_indices = @transform_17, window_bounds = array<i64: 1, 2>}, {pipeline_mode = #tpu.pipeline_mode<synchronous>, transform_indices = @transform_18, window_bounds = array<i64: 8, 2>}, {pipeline_mode = #tpu.pipeline_mode<synchronous>, transform_indices = @transform_19, window_bounds = array<i64: 8, 1>}, {transform_indices = @transform_20, window_bounds = array<i64: 1, 8, 256>}]} {
    %c0 = arith.constant 0 : index
    %c0_0 = arith.constant 0 : index
    %c0_1 = arith.constant 0 : index
    %0 = vector.load %arg1[%c0, %c0_0, %c0_1] : memref<1x8x256xf32, #tpu.memory_space<vmem>>, vector<1x8x256xf32>
    %1 = vector.shape_cast %0 : vector<1x8x256xf32> to vector<8x256xf32>
    %c0_2 = arith.constant 0 : index
    %c0_3 = arith.constant 0 : index
    %2 = vector.load %arg2[%c0_2, %c0_3] : memref<9x256xf32, #tpu.memory_space<vmem>>, vector<1x256xf32>
    %c1 = arith.constant 1 : index
    %c0_4 = arith.constant 0 : index
    %3 = vector.load %arg2[%c1, %c0_4] : memref<9x256xf32, #tpu.memory_space<vmem>>, vector<1x256xf32>
    %c2 = arith.constant 2 : index
    %c0_5 = arith.constant 0 : index
    %4 = vector.load %arg2[%c2, %c0_5] : memref<9x256xf32, #tpu.memory_space<vmem>>, vector<1x256xf32>
    %c3 = arith.constant 3 : index
    %c0_6 = arith.constant 0 : index
    %5 = vector.load %arg2[%c3, %c0_6] : memref<9x256xf32, #tpu.memory_space<vmem>>, vector<1x256xf32>
    %c5 = arith.constant 5 : index
    %c0_7 = arith.constant 0 : index
    %6 = vector.load %arg2[%c5, %c0_7] : memref<9x256xf32, #tpu.memory_space<vmem>>, vector<1x256xf32>
    %c6 = arith.constant 6 : index
    %c0_8 = arith.constant 0 : index
    %7 = vector.load %arg2[%c6, %c0_8] : memref<9x256xf32, #tpu.memory_space<vmem>>, vector<1x256xf32>
    %c7 = arith.constant 7 : index
    %c0_9 = arith.constant 0 : index
    %8 = vector.load %arg2[%c7, %c0_9] : memref<9x256xf32, #tpu.memory_space<vmem>>, vector<1x256xf32>
    %c8 = arith.constant 8 : index
    %c0_10 = arith.constant 0 : index
    %9 = vector.load %arg2[%c8, %c0_10] : memref<9x256xf32, #tpu.memory_space<vmem>>, vector<1x256xf32>
    %c0_11 = arith.constant 0 : index
    %c0_12 = arith.constant 0 : index
    %10 = vector.load %arg3[%c0_11, %c0_12] : memref<8x8xf32, #tpu.memory_space<vmem>>, vector<8x8xf32>
    %cst = arith.constant dense<0.000000e+00> : vector<8x256xf32>
    %11 = tpu.matmul %10, %1, %cst {dimension_numbers = #tpu.dot_dimension_numbers<[1], [0], [0], [1], [0, 0, 1, 1], [], []>} : vector<8x8xf32>, vector<8x256xf32>, vector<8x256xf32> -> vector<8x256xf32>
    %c0_13 = arith.constant 0 : index
    %c0_14 = arith.constant 0 : index
    %12 = vector.load %arg4[%c0_13, %c0_14] : memref<8x1xf32, #tpu.memory_space<vmem>>, vector<8x1xf32>
    %13 = vector.broadcast %12 : vector<8x1xf32> to vector<8x256xf32>
    %14 = arith.addf %11, %13 : vector<8x256xf32>
    %cst_15 = arith.constant 0.000000e+00 : f32
    %15 = vector.broadcast %cst_15 : f32 to vector<8x256xf32>
    %16 = arith.maximumf %14, %15 : vector<8x256xf32>
    %c17_i32 = arith.constant 17 : i32
    %17 = tpu.dynamic_rotate %16 by %c17_i32 dim 1 : vector<8x256xf32>, i32 -> vector<8x256xf32>
    %18 = vector.broadcast %2 : vector<1x256xf32> to vector<8x256xf32>
    %19 = arith.mulf %17, %18 : vector<8x256xf32>
    %c16_i32 = arith.constant 16 : i32
    %20 = tpu.dynamic_rotate %16 by %c16_i32 dim 1 : vector<8x256xf32>, i32 -> vector<8x256xf32>
    %21 = vector.broadcast %3 : vector<1x256xf32> to vector<8x256xf32>
    %22 = arith.mulf %20, %21 : vector<8x256xf32>
    %c15_i32 = arith.constant 15 : i32
    %23 = tpu.dynamic_rotate %16 by %c15_i32 dim 1 : vector<8x256xf32>, i32 -> vector<8x256xf32>
    %24 = vector.broadcast %4 : vector<1x256xf32> to vector<8x256xf32>
    %25 = arith.mulf %23, %24 : vector<8x256xf32>
    %c1_i32 = arith.constant 1 : i32
    %26 = tpu.dynamic_rotate %16 by %c1_i32 dim 1 : vector<8x256xf32>, i32 -> vector<8x256xf32>
    %27 = vector.broadcast %5 : vector<1x256xf32> to vector<8x256xf32>
    %28 = arith.mulf %26, %27 : vector<8x256xf32>
    %c255_i32 = arith.constant 255 : i32
    %29 = tpu.dynamic_rotate %16 by %c255_i32 dim 1 : vector<8x256xf32>, i32 -> vector<8x256xf32>
    %30 = vector.broadcast %6 : vector<1x256xf32> to vector<8x256xf32>
    %31 = arith.mulf %29, %30 : vector<8x256xf32>
    %c241_i32 = arith.constant 241 : i32
    %32 = tpu.dynamic_rotate %16 by %c241_i32 dim 1 : vector<8x256xf32>, i32 -> vector<8x256xf32>
    %33 = vector.broadcast %7 : vector<1x256xf32> to vector<8x256xf32>
    %34 = arith.mulf %32, %33 : vector<8x256xf32>
    %c240_i32 = arith.constant 240 : i32
    %35 = tpu.dynamic_rotate %16 by %c240_i32 dim 1 : vector<8x256xf32>, i32 -> vector<8x256xf32>
    %36 = vector.broadcast %8 : vector<1x256xf32> to vector<8x256xf32>
    %37 = arith.mulf %35, %36 : vector<8x256xf32>
    %c239_i32 = arith.constant 239 : i32
    %38 = tpu.dynamic_rotate %16 by %c239_i32 dim 1 : vector<8x256xf32>, i32 -> vector<8x256xf32>
    %39 = vector.broadcast %9 : vector<1x256xf32> to vector<8x256xf32>
    %40 = arith.mulf %38, %39 : vector<8x256xf32>
    %c0_16 = arith.constant 0 : index
    %c0_17 = arith.constant 0 : index
    %41 = vector.load %arg5[%c0_16, %c0_17] : memref<8x9xf32, #tpu.memory_space<vmem>>, vector<8x1xf32>
    %42 = vector.broadcast %41 : vector<8x1xf32> to vector<8x256xf32>
    %43 = arith.mulf %19, %42 : vector<8x256xf32>
    %c0_18 = arith.constant 0 : index
    %c1_19 = arith.constant 1 : index
    %44 = vector.load %arg5[%c0_18, %c1_19] : memref<8x9xf32, #tpu.memory_space<vmem>>, vector<8x1xf32>
    %45 = vector.broadcast %44 : vector<8x1xf32> to vector<8x256xf32>
    %46 = arith.mulf %22, %45 : vector<8x256xf32>
    %47 = arith.addf %43, %46 : vector<8x256xf32>
    %c0_20 = arith.constant 0 : index
    %c2_21 = arith.constant 2 : index
    %48 = vector.load %arg5[%c0_20, %c2_21] : memref<8x9xf32, #tpu.memory_space<vmem>>, vector<8x1xf32>
    %49 = vector.broadcast %48 : vector<8x1xf32> to vector<8x256xf32>
    %50 = arith.mulf %25, %49 : vector<8x256xf32>
    %51 = arith.addf %47, %50 : vector<8x256xf32>
    %c0_22 = arith.constant 0 : index
    %c3_23 = arith.constant 3 : index
    %52 = vector.load %arg5[%c0_22, %c3_23] : memref<8x9xf32, #tpu.memory_space<vmem>>, vector<8x1xf32>
    %53 = vector.broadcast %52 : vector<8x1xf32> to vector<8x256xf32>
    %54 = arith.mulf %28, %53 : vector<8x256xf32>
    %55 = arith.addf %51, %54 : vector<8x256xf32>
    %c0_24 = arith.constant 0 : index
    %c4 = arith.constant 4 : index
    %56 = vector.load %arg5[%c0_24, %c4] : memref<8x9xf32, #tpu.memory_space<vmem>>, vector<8x1xf32>
    %57 = vector.broadcast %56 : vector<8x1xf32> to vector<8x256xf32>
    %58 = arith.mulf %16, %57 : vector<8x256xf32>
    %59 = arith.addf %55, %58 : vector<8x256xf32>
    %c0_25 = arith.constant 0 : index
    %c5_26 = arith.constant 5 : index
    %60 = vector.load %arg5[%c0_25, %c5_26] : memref<8x9xf32, #tpu.memory_space<vmem>>, vector<8x1xf32>
    %61 = vector.broadcast %60 : vector<8x1xf32> to vector<8x256xf32>
    %62 = arith.mulf %31, %61 : vector<8x256xf32>
    %63 = arith.addf %59, %62 : vector<8x256xf32>
    %c0_27 = arith.constant 0 : index
    %c6_28 = arith.constant 6 : index
    %64 = vector.load %arg5[%c0_27, %c6_28] : memref<8x9xf32, #tpu.memory_space<vmem>>, vector<8x1xf32>
    %65 = vector.broadcast %64 : vector<8x1xf32> to vector<8x256xf32>
    %66 = arith.mulf %34, %65 : vector<8x256xf32>
    %67 = arith.addf %63, %66 : vector<8x256xf32>
    %c0_29 = arith.constant 0 : index
    %c7_30 = arith.constant 7 : index
    %68 = vector.load %arg5[%c0_29, %c7_30] : memref<8x9xf32, #tpu.memory_space<vmem>>, vector<8x1xf32>
    %69 = vector.broadcast %68 : vector<8x1xf32> to vector<8x256xf32>
    %70 = arith.mulf %37, %69 : vector<8x256xf32>
    %71 = arith.addf %67, %70 : vector<8x256xf32>
    %c0_31 = arith.constant 0 : index
    %c8_32 = arith.constant 8 : index
    %72 = vector.load %arg5[%c0_31, %c8_32] : memref<8x9xf32, #tpu.memory_space<vmem>>, vector<8x1xf32>
    %73 = vector.broadcast %72 : vector<8x1xf32> to vector<8x256xf32>
    %74 = arith.mulf %40, %73 : vector<8x256xf32>
    %75 = arith.addf %71, %74 : vector<8x256xf32>
    %c0_33 = arith.constant 0 : index
    %c0_34 = arith.constant 0 : index
    %76 = vector.load %arg6[%c0_33, %c0_34] : memref<8x1xf32, #tpu.memory_space<vmem>>, vector<8x1xf32>
    %77 = vector.broadcast %76 : vector<8x1xf32> to vector<8x256xf32>
    %78 = arith.addf %75, %77 : vector<8x256xf32>
    %cst_35 = arith.constant 0.000000e+00 : f32
    %79 = vector.broadcast %cst_35 : f32 to vector<8x256xf32>
    %80 = arith.maximumf %78, %79 : vector<8x256xf32>
    %c4_i32 = arith.constant 4 : i32
    %81 = tpu.dynamic_rotate %80 by %c4_i32 dim 0 : vector<8x256xf32>, i32 -> vector<8x256xf32>
    %82 = arith.addf %16, %81 : vector<8x256xf32>
    %c17_i32_36 = arith.constant 17 : i32
    %83 = tpu.dynamic_rotate %82 by %c17_i32_36 dim 1 : vector<8x256xf32>, i32 -> vector<8x256xf32>
    %84 = vector.broadcast %2 : vector<1x256xf32> to vector<8x256xf32>
    %85 = arith.mulf %83, %84 : vector<8x256xf32>
    %c16_i32_37 = arith.constant 16 : i32
    %86 = tpu.dynamic_rotate %82 by %c16_i32_37 dim 1 : vector<8x256xf32>, i32 -> vector<8x256xf32>
    %87 = vector.broadcast %3 : vector<1x256xf32> to vector<8x256xf32>
    %88 = arith.mulf %86, %87 : vector<8x256xf32>
    %c15_i32_38 = arith.constant 15 : i32
    %89 = tpu.dynamic_rotate %82 by %c15_i32_38 dim 1 : vector<8x256xf32>, i32 -> vector<8x256xf32>
    %90 = vector.broadcast %4 : vector<1x256xf32> to vector<8x256xf32>
    %91 = arith.mulf %89, %90 : vector<8x256xf32>
    %c1_i32_39 = arith.constant 1 : i32
    %92 = tpu.dynamic_rotate %82 by %c1_i32_39 dim 1 : vector<8x256xf32>, i32 -> vector<8x256xf32>
    %93 = vector.broadcast %5 : vector<1x256xf32> to vector<8x256xf32>
    %94 = arith.mulf %92, %93 : vector<8x256xf32>
    %c255_i32_40 = arith.constant 255 : i32
    %95 = tpu.dynamic_rotate %82 by %c255_i32_40 dim 1 : vector<8x256xf32>, i32 -> vector<8x256xf32>
    %96 = vector.broadcast %6 : vector<1x256xf32> to vector<8x256xf32>
    %97 = arith.mulf %95, %96 : vector<8x256xf32>
    %c241_i32_41 = arith.constant 241 : i32
    %98 = tpu.dynamic_rotate %82 by %c241_i32_41 dim 1 : vector<8x256xf32>, i32 -> vector<8x256xf32>
    %99 = vector.broadcast %7 : vector<1x256xf32> to vector<8x256xf32>
    %100 = arith.mulf %98, %99 : vector<8x256xf32>
    %c240_i32_42 = arith.constant 240 : i32
    %101 = tpu.dynamic_rotate %82 by %c240_i32_42 dim 1 : vector<8x256xf32>, i32 -> vector<8x256xf32>
    %102 = vector.broadcast %8 : vector<1x256xf32> to vector<8x256xf32>
    %103 = arith.mulf %101, %102 : vector<8x256xf32>
    %c239_i32_43 = arith.constant 239 : i32
    %104 = tpu.dynamic_rotate %82 by %c239_i32_43 dim 1 : vector<8x256xf32>, i32 -> vector<8x256xf32>
    %105 = vector.broadcast %9 : vector<1x256xf32> to vector<8x256xf32>
    %106 = arith.mulf %104, %105 : vector<8x256xf32>
    %107 = tpu.concatenate %85, %88, %91, %94, %82, %97, %100, %103, %106 in 0 : vector<8x256xf32>, vector<8x256xf32>, vector<8x256xf32>, vector<8x256xf32>, vector<8x256xf32>, vector<8x256xf32>, vector<8x256xf32>, vector<8x256xf32>, vector<8x256xf32> -> vector<72x256xf32>
    %c0_44 = arith.constant 0 : index
    %c0_45 = arith.constant 0 : index
    %108 = vector.load %arg7[%c0_44, %c0_45] : memref<8x72xf32, #tpu.memory_space<vmem>>, vector<8x72xf32>
    %cst_46 = arith.constant dense<0.000000e+00> : vector<8x256xf32>
    %109 = tpu.matmul %108, %107, %cst_46 {dimension_numbers = #tpu.dot_dimension_numbers<[1], [0], [0], [1], [0, 0, 1, 1], [], []>} : vector<8x72xf32>, vector<72x256xf32>, vector<8x256xf32> -> vector<8x256xf32>
    %c0_47 = arith.constant 0 : index
    %c0_48 = arith.constant 0 : index
    %110 = vector.load %arg8[%c0_47, %c0_48] : memref<8x1xf32, #tpu.memory_space<vmem>>, vector<8x1xf32>
    %111 = vector.broadcast %110 : vector<8x1xf32> to vector<8x256xf32>
    %112 = arith.addf %109, %111 : vector<8x256xf32>
    %cst_49 = arith.constant 0.000000e+00 : f32
    %113 = vector.broadcast %cst_49 : f32 to vector<8x256xf32>
    %114 = arith.maximumf %112, %113 : vector<8x256xf32>
    %c0_50 = arith.constant 0 : index
    %c0_51 = arith.constant 0 : index
    %115 = vector.load %arg9[%c0_50, %c0_51] : memref<8x8xf32, #tpu.memory_space<vmem>>, vector<8x8xf32>
    %cst_52 = arith.constant dense<0.000000e+00> : vector<8x256xf32>
    %116 = tpu.matmul %115, %114, %cst_52 {dimension_numbers = #tpu.dot_dimension_numbers<[1], [0], [0], [1], [0, 0, 1, 1], [], []>} : vector<8x8xf32>, vector<8x256xf32>, vector<8x256xf32> -> vector<8x256xf32>
    %c0_53 = arith.constant 0 : index
    %c0_54 = arith.constant 0 : index
    %117 = vector.load %arg10[%c0_53, %c0_54] : memref<8x1xf32, #tpu.memory_space<vmem>>, vector<8x1xf32>
    %118 = vector.broadcast %117 : vector<8x1xf32> to vector<8x256xf32>
    %119 = arith.addf %116, %118 : vector<8x256xf32>
    %c17_i32_55 = arith.constant 17 : i32
    %120 = tpu.dynamic_rotate %119 by %c17_i32_55 dim 1 : vector<8x256xf32>, i32 -> vector<8x256xf32>
    %121 = vector.broadcast %2 : vector<1x256xf32> to vector<8x256xf32>
    %122 = arith.mulf %120, %121 : vector<8x256xf32>
    %c16_i32_56 = arith.constant 16 : i32
    %123 = tpu.dynamic_rotate %119 by %c16_i32_56 dim 1 : vector<8x256xf32>, i32 -> vector<8x256xf32>
    %124 = vector.broadcast %3 : vector<1x256xf32> to vector<8x256xf32>
    %125 = arith.mulf %123, %124 : vector<8x256xf32>
    %c15_i32_57 = arith.constant 15 : i32
    %126 = tpu.dynamic_rotate %119 by %c15_i32_57 dim 1 : vector<8x256xf32>, i32 -> vector<8x256xf32>
    %127 = vector.broadcast %4 : vector<1x256xf32> to vector<8x256xf32>
    %128 = arith.mulf %126, %127 : vector<8x256xf32>
    %c1_i32_58 = arith.constant 1 : i32
    %129 = tpu.dynamic_rotate %119 by %c1_i32_58 dim 1 : vector<8x256xf32>, i32 -> vector<8x256xf32>
    %130 = vector.broadcast %5 : vector<1x256xf32> to vector<8x256xf32>
    %131 = arith.mulf %129, %130 : vector<8x256xf32>
    %c255_i32_59 = arith.constant 255 : i32
    %132 = tpu.dynamic_rotate %119 by %c255_i32_59 dim 1 : vector<8x256xf32>, i32 -> vector<8x256xf32>
    %133 = vector.broadcast %6 : vector<1x256xf32> to vector<8x256xf32>
    %134 = arith.mulf %132, %133 : vector<8x256xf32>
    %c241_i32_60 = arith.constant 241 : i32
    %135 = tpu.dynamic_rotate %119 by %c241_i32_60 dim 1 : vector<8x256xf32>, i32 -> vector<8x256xf32>
    %136 = vector.broadcast %7 : vector<1x256xf32> to vector<8x256xf32>
    %137 = arith.mulf %135, %136 : vector<8x256xf32>
    %c240_i32_61 = arith.constant 240 : i32
    %138 = tpu.dynamic_rotate %119 by %c240_i32_61 dim 1 : vector<8x256xf32>, i32 -> vector<8x256xf32>
    %139 = vector.broadcast %8 : vector<1x256xf32> to vector<8x256xf32>
    %140 = arith.mulf %138, %139 : vector<8x256xf32>
    %c239_i32_62 = arith.constant 239 : i32
    %141 = tpu.dynamic_rotate %119 by %c239_i32_62 dim 1 : vector<8x256xf32>, i32 -> vector<8x256xf32>
    %142 = vector.broadcast %9 : vector<1x256xf32> to vector<8x256xf32>
    %143 = arith.mulf %141, %142 : vector<8x256xf32>
    %c0_63 = arith.constant 0 : index
    %c0_64 = arith.constant 0 : index
    %144 = vector.load %arg11[%c0_63, %c0_64] : memref<8x9xf32, #tpu.memory_space<vmem>>, vector<8x1xf32>
    %145 = vector.broadcast %144 : vector<8x1xf32> to vector<8x256xf32>
    %146 = arith.mulf %122, %145 : vector<8x256xf32>
    %c0_65 = arith.constant 0 : index
    %c1_66 = arith.constant 1 : index
    %147 = vector.load %arg11[%c0_65, %c1_66] : memref<8x9xf32, #tpu.memory_space<vmem>>, vector<8x1xf32>
    %148 = vector.broadcast %147 : vector<8x1xf32> to vector<8x256xf32>
    %149 = arith.mulf %125, %148 : vector<8x256xf32>
    %150 = arith.addf %146, %149 : vector<8x256xf32>
    %c0_67 = arith.constant 0 : index
    %c2_68 = arith.constant 2 : index
    %151 = vector.load %arg11[%c0_67, %c2_68] : memref<8x9xf32, #tpu.memory_space<vmem>>, vector<8x1xf32>
    %152 = vector.broadcast %151 : vector<8x1xf32> to vector<8x256xf32>
    %153 = arith.mulf %128, %152 : vector<8x256xf32>
    %154 = arith.addf %150, %153 : vector<8x256xf32>
    %c0_69 = arith.constant 0 : index
    %c3_70 = arith.constant 3 : index
    %155 = vector.load %arg11[%c0_69, %c3_70] : memref<8x9xf32, #tpu.memory_space<vmem>>, vector<8x1xf32>
    %156 = vector.broadcast %155 : vector<8x1xf32> to vector<8x256xf32>
    %157 = arith.mulf %131, %156 : vector<8x256xf32>
    %158 = arith.addf %154, %157 : vector<8x256xf32>
    %c0_71 = arith.constant 0 : index
    %c4_72 = arith.constant 4 : index
    %159 = vector.load %arg11[%c0_71, %c4_72] : memref<8x9xf32, #tpu.memory_space<vmem>>, vector<8x1xf32>
    %160 = vector.broadcast %159 : vector<8x1xf32> to vector<8x256xf32>
    %161 = arith.mulf %119, %160 : vector<8x256xf32>
    %162 = arith.addf %158, %161 : vector<8x256xf32>
    %c0_73 = arith.constant 0 : index
    %c5_74 = arith.constant 5 : index
    %163 = vector.load %arg11[%c0_73, %c5_74] : memref<8x9xf32, #tpu.memory_space<vmem>>, vector<8x1xf32>
    %164 = vector.broadcast %163 : vector<8x1xf32> to vector<8x256xf32>
    %165 = arith.mulf %134, %164 : vector<8x256xf32>
    %166 = arith.addf %162, %165 : vector<8x256xf32>
    %c0_75 = arith.constant 0 : index
    %c6_76 = arith.constant 6 : index
    %167 = vector.load %arg11[%c0_75, %c6_76] : memref<8x9xf32, #tpu.memory_space<vmem>>, vector<8x1xf32>
    %168 = vector.broadcast %167 : vector<8x1xf32> to vector<8x256xf32>
    %169 = arith.mulf %137, %168 : vector<8x256xf32>
    %170 = arith.addf %166, %169 : vector<8x256xf32>
    %c0_77 = arith.constant 0 : index
    %c7_78 = arith.constant 7 : index
    %171 = vector.load %arg11[%c0_77, %c7_78] : memref<8x9xf32, #tpu.memory_space<vmem>>, vector<8x1xf32>
    %172 = vector.broadcast %171 : vector<8x1xf32> to vector<8x256xf32>
    %173 = arith.mulf %140, %172 : vector<8x256xf32>
    %174 = arith.addf %170, %173 : vector<8x256xf32>
    %c0_79 = arith.constant 0 : index
    %c8_80 = arith.constant 8 : index
    %175 = vector.load %arg11[%c0_79, %c8_80] : memref<8x9xf32, #tpu.memory_space<vmem>>, vector<8x1xf32>
    %176 = vector.broadcast %175 : vector<8x1xf32> to vector<8x256xf32>
    %177 = arith.mulf %143, %176 : vector<8x256xf32>
    %178 = arith.addf %174, %177 : vector<8x256xf32>
    %c0_81 = arith.constant 0 : index
    %c0_82 = arith.constant 0 : index
    %179 = vector.load %arg12[%c0_81, %c0_82] : memref<8x1xf32, #tpu.memory_space<vmem>>, vector<8x1xf32>
    %180 = vector.broadcast %179 : vector<8x1xf32> to vector<8x256xf32>
    %181 = arith.addf %178, %180 : vector<8x256xf32>
    %c4_i32_83 = arith.constant 4 : i32
    %182 = tpu.dynamic_rotate %181 by %c4_i32_83 dim 0 : vector<8x256xf32>, i32 -> vector<8x256xf32>
    %183 = arith.addf %119, %182 : vector<8x256xf32>
    %c0_84 = arith.constant 0 : index
    %c0_85 = arith.constant 0 : index
    %184 = vector.load %arg13[%c0_84, %c0_85] : memref<8x1xf32, #tpu.memory_space<vmem>>, vector<8x1xf32>
    %185 = vector.broadcast %184 : vector<8x1xf32> to vector<8x256xf32>
    %186 = arith.mulf %183, %185 : vector<8x256xf32>
    %cst_86 = arith.constant dense<0.000000e+00> : vector<256xf32>
    %187 = vector.multi_reduction <add>, %186, %cst_86 [0] : vector<8x256xf32> to vector<256xf32>
    %188 = vector.shape_cast %187 : vector<256xf32> to vector<1x256xf32>
    %c0_87 = arith.constant 0 : index
    %c0_88 = arith.constant 0 : index
    %189 = vector.load %arg14[%c0_87, %c0_88] : memref<1x1xf32, #tpu.memory_space<vmem>>, vector<1x1xf32>
    %190 = vector.broadcast %189 : vector<1x1xf32> to vector<1x256xf32>
    %191 = arith.addf %188, %190 : vector<1x256xf32>
    %cst_89 = arith.constant dense<0xFF800000> : vector<1xf32>
    %192 = vector.multi_reduction <maximumf>, %191, %cst_89 [1] : vector<1x256xf32> to vector<1xf32>
    %193 = vector.shape_cast %192 : vector<1xf32> to vector<1x1xf32>
    %194 = vector.broadcast %193 : vector<1x1xf32> to vector<1x256xf32>
    %195 = arith.subf %191, %194 : vector<1x256xf32>
    %196 = math.exp %195 : vector<1x256xf32>
    %cst_90 = arith.constant dense<0.000000e+00> : vector<1xf32>
    %197 = vector.multi_reduction <add>, %196, %cst_90 [1] : vector<1x256xf32> to vector<1xf32>
    %198 = vector.shape_cast %197 : vector<1xf32> to vector<1x1xf32>
    %199 = vector.broadcast %198 : vector<1x1xf32> to vector<1x256xf32>
    %200 = arith.divf %196, %199 : vector<1x256xf32>
    %201 = vector.broadcast %200 : vector<1x256xf32> to vector<8x256xf32>
    %202 = arith.mulf %183, %201 : vector<8x256xf32>
    %cst_91 = arith.constant dense<0.000000e+00> : vector<8xf32>
    %203 = vector.multi_reduction <add>, %202, %cst_91 [1] : vector<8x256xf32> to vector<8xf32>
    %204 = vector.shape_cast %203 : vector<8xf32> to vector<8x1xf32>
    %c0_92 = arith.constant 0 : index
    %c0_93 = arith.constant 0 : index
    %205 = vector.load %arg15[%c0_92, %c0_93] : memref<8x2xf32, #tpu.memory_space<vmem>>, vector<8x2xf32>
    %206 = vector.broadcast %204 : vector<8x1xf32> to vector<8x2xf32>
    %207 = arith.mulf %205, %206 : vector<8x2xf32>
    %cst_94 = arith.constant dense<0.000000e+00> : vector<2xf32>
    %208 = vector.multi_reduction <add>, %207, %cst_94 [0] : vector<8x2xf32> to vector<2xf32>
    %209 = vector.shape_cast %208 : vector<2xf32> to vector<1x2xf32>
    %c0_95 = arith.constant 0 : index
    %c0_96 = arith.constant 0 : index
    %210 = vector.load %arg16[%c0_95, %c0_96] : memref<1x2xf32, #tpu.memory_space<vmem>>, vector<1x2xf32>
    %211 = arith.addf %209, %210 : vector<1x2xf32>
    %cst_97 = arith.constant dense<0.000000e+00> : vector<1xf32>
    %212 = vector.multi_reduction <add>, %211, %cst_97 [1] : vector<1x2xf32> to vector<1xf32>
    %213 = vector.shape_cast %212 : vector<1xf32> to vector<1x1xf32>
    %cst_98 = arith.constant 2.000000e+00 : f32
    %214 = vector.broadcast %cst_98 : f32 to vector<1x1xf32>
    %215 = arith.divf %213, %214 : vector<1x1xf32>
    %216 = vector.broadcast %215 : vector<1x1xf32> to vector<1x2xf32>
    %217 = arith.subf %211, %216 : vector<1x2xf32>
    %218 = arith.mulf %217, %217 : vector<1x2xf32>
    %cst_99 = arith.constant dense<0.000000e+00> : vector<1xf32>
    %219 = vector.multi_reduction <add>, %218, %cst_99 [1] : vector<1x2xf32> to vector<1xf32>
    %220 = vector.shape_cast %219 : vector<1xf32> to vector<1x1xf32>
    %cst_100 = arith.constant 2.000000e+00 : f32
    %221 = vector.broadcast %cst_100 : f32 to vector<1x1xf32>
    %222 = arith.divf %220, %221 : vector<1x1xf32>
    %223 = vector.broadcast %215 : vector<1x1xf32> to vector<1x2xf32>
    %224 = arith.subf %211, %223 : vector<1x2xf32>
    %cst_101 = arith.constant 9.99999974E-6 : f32
    %225 = vector.broadcast %cst_101 : f32 to vector<1x1xf32>
    %226 = arith.addf %222, %225 : vector<1x1xf32>
    %227 = math.rsqrt %226 : vector<1x1xf32>
    %228 = vector.broadcast %227 : vector<1x1xf32> to vector<1x2xf32>
    %229 = arith.mulf %224, %228 : vector<1x2xf32>
    %c0_102 = arith.constant 0 : index
    %c0_103 = arith.constant 0 : index
    %230 = vector.load %arg17[%c0_102, %c0_103] : memref<1x2xf32, #tpu.memory_space<vmem>>, vector<1x2xf32>
    %231 = arith.mulf %229, %230 : vector<1x2xf32>
    %c0_104 = arith.constant 0 : index
    %c0_105 = arith.constant 0 : index
    %232 = vector.load %arg18[%c0_104, %c0_105] : memref<1x2xf32, #tpu.memory_space<vmem>>, vector<1x2xf32>
    %233 = arith.addf %231, %232 : vector<1x2xf32>
    %cst_106 = arith.constant 0.000000e+00 : f32
    %234 = vector.broadcast %cst_106 : f32 to vector<1x2xf32>
    %235 = arith.maximumf %233, %234 : vector<1x2xf32>
    %c0_107 = arith.constant 0 : index
    %c0_108 = arith.constant 0 : index
    %236 = vector.load %arg19[%c0_107, %c0_108] : memref<8x2xf32, #tpu.memory_space<vmem>>, vector<8x2xf32>
    %237 = vector.broadcast %235 : vector<1x2xf32> to vector<8x2xf32>
    %238 = arith.mulf %236, %237 : vector<8x2xf32>
    %cst_109 = arith.constant dense<0.000000e+00> : vector<8xf32>
    %239 = vector.multi_reduction <add>, %238, %cst_109 [1] : vector<8x2xf32> to vector<8xf32>
    %240 = vector.shape_cast %239 : vector<8xf32> to vector<8x1xf32>
    %c0_110 = arith.constant 0 : index
    %c0_111 = arith.constant 0 : index
    %241 = vector.load %arg20[%c0_110, %c0_111] : memref<8x1xf32, #tpu.memory_space<vmem>>, vector<8x1xf32>
    %242 = arith.addf %240, %241 : vector<8x1xf32>
    %243 = vector.broadcast %242 : vector<8x1xf32> to vector<8x256xf32>
    %244 = arith.addf %183, %243 : vector<8x256xf32>
    %245 = arith.addf %244, %1 : vector<8x256xf32>
    %cst_112 = arith.constant 0.000000e+00 : f32
    %246 = vector.broadcast %cst_112 : f32 to vector<8x256xf32>
    %247 = arith.maximumf %245, %246 : vector<8x256xf32>
    %c0_113 = arith.constant 0 : index
    %c0_114 = arith.constant 0 : index
    %c0_115 = arith.constant 0 : index
    %248 = vector.load %arg21[%c0_113, %c0_114, %c0_115] : memref<1x8x256xf32, #tpu.memory_space<vmem>>, vector<1x8x256xf32>
    %249 = vector.shape_cast %248 : vector<1x8x256xf32> to vector<8x256xf32>
    %250 = vector.shape_cast %247 : vector<8x256xf32> to vector<1x8x256xf32>
    tpu.vector_store %arg21[%c0_113, %c0_114, %c0_115], %250 {strides = array<i32>} : memref<1x8x256xf32, #tpu.memory_space<vmem>>, vector<1x8x256xf32>,
    return
  }
  func.func @transform_0(%arg0: i32) -> (i32, i32, i32) {
    %c0_i32 = arith.constant 0 : i32
    %c0_i32_0 = arith.constant 0 : i32
    %c0_i32_1 = arith.constant 0 : i32
    return %arg0, %c0_i32, %c0_i32_0 : i32, i32, i32
  }
  func.func @transform_1(%arg0: i32) -> (i32, i32) {
    %c0_i32 = arith.constant 0 : i32
    %c0_i32_0 = arith.constant 0 : i32
    %c0_i32_1 = arith.constant 0 : i32
    return %c0_i32, %c0_i32_0 : i32, i32
  }
  func.func @transform_2(%arg0: i32) -> (i32, i32) {
    %c0_i32 = arith.constant 0 : i32
    %c0_i32_0 = arith.constant 0 : i32
    %c0_i32_1 = arith.constant 0 : i32
    return %c0_i32, %c0_i32_0 : i32, i32
  }
  func.func @transform_3(%arg0: i32) -> (i32, i32) {
    %c0_i32 = arith.constant 0 : i32
    %c0_i32_0 = arith.constant 0 : i32
    %c0_i32_1 = arith.constant 0 : i32
    return %c0_i32, %c0_i32_0 : i32, i32
  }
  func.func @transform_4(%arg0: i32) -> (i32, i32) {
    %c0_i32 = arith.constant 0 : i32
    %c0_i32_0 = arith.constant 0 : i32
    %c0_i32_1 = arith.constant 0 : i32
    return %c0_i32, %c0_i32_0 : i32, i32
  }
  func.func @transform_5(%arg0: i32) -> (i32, i32) {
    %c0_i32 = arith.constant 0 : i32
    %c0_i32_0 = arith.constant 0 : i32
    %c0_i32_1 = arith.constant 0 : i32
    return %c0_i32, %c0_i32_0 : i32, i32
  }
  func.func @transform_6(%arg0: i32) -> (i32, i32) {
    %c0_i32 = arith.constant 0 : i32
    %c0_i32_0 = arith.constant 0 : i32
    %c0_i32_1 = arith.constant 0 : i32
    return %c0_i32, %c0_i32_0 : i32, i32
  }
  func.func @transform_7(%arg0: i32) -> (i32, i32) {
    %c0_i32 = arith.constant 0 : i32
    %c0_i32_0 = arith.constant 0 : i32
    %c0_i32_1 = arith.constant 0 : i32
    return %c0_i32, %c0_i32_0 : i32, i32
  }
  func.func @transform_8(%arg0: i32) -> (i32, i32) {
    %c0_i32 = arith.constant 0 : i32
    %c0_i32_0 = arith.constant 0 : i32
    %c0_i32_1 = arith.constant 0 : i32
    return %c0_i32, %c0_i32_0 : i32, i32
  }
  func.func @transform_9(%arg0: i32) -> (i32, i32) {
    %c0_i32 = arith.constant 0 : i32
    %c0_i32_0 = arith.constant 0 : i32
    %c0_i32_1 = arith.constant 0 : i32
    return %c0_i32, %c0_i32_0 : i32, i32
  }
  func.func @transform_10(%arg0: i32) -> (i32, i32) {
    %c0_i32 = arith.constant 0 : i32
    %c0_i32_0 = arith.constant 0 : i32
    %c0_i32_1 = arith.constant 0 : i32
    return %c0_i32, %c0_i32_0 : i32, i32
  }
  func.func @transform_11(%arg0: i32) -> (i32, i32) {
    %c0_i32 = arith.constant 0 : i32
    %c0_i32_0 = arith.constant 0 : i32
    %c0_i32_1 = arith.constant 0 : i32
    return %c0_i32, %c0_i32_0 : i32, i32
  }
  func.func @transform_12(%arg0: i32) -> (i32, i32) {
    %c0_i32 = arith.constant 0 : i32
    %c0_i32_0 = arith.constant 0 : i32
    %c0_i32_1 = arith.constant 0 : i32
    return %c0_i32, %c0_i32_0 : i32, i32
  }
  func.func @transform_13(%arg0: i32) -> (i32, i32) {
    %c0_i32 = arith.constant 0 : i32
    %c0_i32_0 = arith.constant 0 : i32
    %c0_i32_1 = arith.constant 0 : i32
    return %c0_i32, %c0_i32_0 : i32, i32
  }
  func.func @transform_14(%arg0: i32) -> (i32, i32) {
    %c0_i32 = arith.constant 0 : i32
    %c0_i32_0 = arith.constant 0 : i32
    %c0_i32_1 = arith.constant 0 : i32
    return %c0_i32, %c0_i32_0 : i32, i32
  }
  func.func @transform_15(%arg0: i32) -> (i32, i32) {
    %c0_i32 = arith.constant 0 : i32
    %c0_i32_0 = arith.constant 0 : i32
    %c0_i32_1 = arith.constant 0 : i32
    return %c0_i32, %c0_i32_0 : i32, i32
  }
  func.func @transform_16(%arg0: i32) -> (i32, i32) {
    %c0_i32 = arith.constant 0 : i32
    %c0_i32_0 = arith.constant 0 : i32
    %c0_i32_1 = arith.constant 0 : i32
    return %c0_i32, %c0_i32_0 : i32, i32
  }
  func.func @transform_17(%arg0: i32) -> (i32, i32) {
    %c0_i32 = arith.constant 0 : i32
    %c0_i32_0 = arith.constant 0 : i32
    %c0_i32_1 = arith.constant 0 : i32
    return %c0_i32, %c0_i32_0 : i32, i32
  }
  func.func @transform_18(%arg0: i32) -> (i32, i32) {
    %c0_i32 = arith.constant 0 : i32
    %c0_i32_0 = arith.constant 0 : i32
    %c0_i32_1 = arith.constant 0 : i32
    return %c0_i32, %c0_i32_0 : i32, i32
  }
  func.func @transform_19(%arg0: i32) -> (i32, i32) {
    %c0_i32 = arith.constant 0 : i32
    %c0_i32_0 = arith.constant 0 : i32
    %c0_i32_1 = arith.constant 0 : i32
    return %c0_i32, %c0_i32_0 : i32, i32
  }
  func.func @transform_20(%arg0: i32) -> (i32, i32, i32) {
    %c0_i32 = arith.constant 0 : i32
    %c0_i32_0 = arith.constant 0 : i32
    %c0_i32_1 = arith.constant 0 : i32
    return %arg0, %c0_i32, %c0_i32_0 : i32, i32, i32
  }
}

</mosaic_0001>

<bundles_post_ra>
// kernel: tpu_custom_call.1
= control target key start
LH: loop header
LB: loop body
LE: loop exit
PB: predicated region body
PF: predicated region fallthrough
CT: control target
= control target key end

     0   :  { %s2436_s0 = inlined_call_operand.vmem [shape: f32[2,8,256], index: 0, kind: input, shape index: {}]   ;;  %s2437_s1 = inlined_call_operand.vmem [shape: f32[9,256], index: 1, kind: input, shape index: {}]   ;;  %s2438_s2 = inlined_call_operand.vmem [shape: f32[8,8], index: 2, kind: input, shape index: {}]   ;;  %s2439_s3 = inlined_call_operand.vmem [shape: f32[8,1], index: 3, kind: input, shape index: {}]   ;;  %s2440_s4 = inlined_call_operand.vmem [shape: f32[8,9], index: 4, kind: input, shape index: {}]   ;;  %s2441_s5 = inlined_call_operand.vmem [shape: f32[8,1], index: 5, kind: input, shape index: {}]   ;;  %s2442_s6 = inlined_call_operand.vmem [shape: f32[8,72], index: 6, kind: input, shape index: {}]   ;;  %s2443_s7 = inlined_call_operand.vmem [shape: f32[8,1], index: 7, kind: input, shape index: {}]   ;;  %s2444_s8 = inlined_call_operand.vmem [shape: f32[8,8], index: 8, kind: input, shape index: {}]   ;;  %s2445_s9 = inlined_call_operand.vmem [shape: f32[8,1], index: 9, kind: input, shape index: {}]   ;;  %s2446_s10 = inlined_call_operand.vmem [shape: f32[8,9], index: 10, kind: input, shape index: {}]   ;;  %s2447_s11 = inlined_call_operand.vmem [shape: f32[8,1], index: 11, kind: input, shape index: {}]   ;;  %s2448_s12 = inlined_call_operand.vmem [shape: f32[8,1], index: 12, kind: input, shape index: {}]   ;;  %s2449_s13 = inlined_call_operand.<no memory space> [shape: f32[1,1], index: 13, kind: input, shape index: {}]   ;;  %s2450_s14 = inlined_call_operand.vmem [shape: f32[8,2], index: 14, kind: input, shape index: {}]   ;;  %s2451_s15 = inlined_call_operand.vmem [shape: f32[1,2], index: 15, kind: input, shape index: {}]   ;;  %s2452_s16 = inlined_call_operand.vmem [shape: f32[1,2], index: 16, kind: input, shape index: {}]   ;;  %s2453_s17 = inlined_call_operand.vmem [shape: f32[1,2], index: 17, kind: input, shape index: {}]   ;;  %s2454_s18 = inlined_call_operand.vmem [shape: f32[8,2], index: 18, kind: input, shape index: {}]   ;;  %s2455_s19 = inlined_call_operand.vmem [shape: f32[8,1], index: 19, kind: input, shape index: {}]   ;;  %s2456_s20 = inlined_call_operand.hbm [shape: f32[2,8,256], index: 20, kind: output, shape index: {}]  }
   0x1   :  { %2479 = sst [smem:[#allocation11_spill]] %s2436_s0  ;;  %v25_v0 = vstv %s2449_s13 }
   0x2   :  { %2480 = sst [smem:[#allocation12_spill]] %s2437_s1  ;;  %26 = vst [vmem:[#allocation2] sm:$0x1] %v25_v0 }
   0x3   :  { %2481 = sst [smem:[#allocation13_spill]] %s2438_s2 }
   0x4   :  { %2482 = sst [smem:[#allocation14_spill]] %s2439_s3 }
   0x5   :  { %2483 = sst [smem:[#allocation15_spill]] %s2440_s4 }
   0x6   :  { %27 = vsyncpa [#allocation4], 0 }
   0x7   :  { %29 = vsyncpa [#allocation4 + $0x1], 0  ;;  %s1857_s23 = smov 0   ;;  %s1859_s24 = smov 0  }
   0x8   :  { %s1861_s2 = smov 0   ;;  %s1863_s25 = smov 0  }
   0x9 LB: > { %2484 = sst [smem:[#allocation6_spill]] %s1716_s23  ;;  %s1878_s13 = sadd.s32 4294967295, %s1728_s25   ;;  %s1728_s25 = sphi %s1863_s25, %s2506_s25   ;;  %s1724_s2 = sphi %s1861_s2, %s2508_s2   ;;  %s1720_s24 = sphi %s1859_s24, %s2510_s24   ;;  %s1716_s23 = sphi %s1857_s23, %s2509_s23  }
   0xa   : > { %2485 = sst [smem:[#allocation7_spill]] %s1724_s2  ;;  %s1538_s3 = sadd.s32 4294967294, %s1728_s25  }
   0xb   : > { %s1882_s26 = sadd.s32 1, %s1728_s25   ;;  %s467_s27 = sadd.s32 1, %s1724_s2 }
   0xc   : > { %2486 = sst [smem:[#allocation8_spill]] %s1882_s26  ;;  %s464_s28 = ssub.s32 %s1728_s25, %s1882_s26 }
   0xd   : > { %p477_p0 = scmp.ne.s32.totalorder %s1724_s2, %s1720_s24  ;;  %p465_p1 = scmp.eq.s32.totalorder %s464_s28, 0 }
   0xe   : > { %p478_p2 = scmp.eq.s32.totalorder %s1878_s13, 1  ;;  %p483_p3 = scmp.ne.s32.totalorder %s1720_s24, %s1716_s23 }
   0xf   : > { %p484_p4 = scmp.eq.s32.totalorder %s1538_s3, 1  ;;  %p1541_p7 = scmp.ge.s32.totalorder %s1728_s25, 1 }
  0x10   : > { %s1893_s4 = scalar_select %p465_p1, %s1724_s2, %s467_s27  }
  0x11   : > { %p1895_p5 = por %p478_p2, %p477_p0  ;;  %p1899_p6 = por %p484_p4, %p483_p3 }
  0x12   : > { %2487 = sst [smem:[#allocation9_spill]] %s1893_s4  ;;  %p567_p8 = scmp.lt.s32.totalorder %s1728_s25, 3 }
  0x13   : > { %s2489_s30 = scalar_select %p1899_p6, 1, 0 }
  0x14   : > { %p568_p9 = pnand %p1541_p7, %p567_p8 }
  0x15   : > { %2490 = sst [smem:[#allocation10_spill]] %s2489_s30  ;;  %p625_p10 = scmp.lt.s32.totalorder (!%p568_p9), %s1878_s13, 1  ;;  %v1730_v2 = vmov (!%p568_p9), 0.0   ;;  %v1731_v3 = vmov (!%p568_p9), 0   ;;  %v1732_v5 = vmov (!%p568_p9), 1   ;;  %vm654_vm0 = vcmask (!%p568_p9), 64512  }
  0x16   : > { %571 = sbr.rel (%p568_p9) target bundleno = 2293 (0x8f5), region = 100  ;;  %s2491_s1 = sld [smem:[#allocation14_spill]] (!%p568_p9)  ;;  %722 = vmatprep.mubr.f32.mxu0 (!%p568_p9), %v1730_v2  ;;  %1635 = vset.pattern.permute.xlu0 (!%p568_p9), %v1731_v3  ;;  %v1733_v9 = vmov (!%p568_p9), 3   ;;  %v1734_v10 = vmov (!%p568_p9), 2   ;;  %v1735_v11 = vmov (!%p568_p9), 4   ;;  %v1736_v12 = vmov (!%p568_p9), 6  }
  0x17   : > { %s2492_s28 = sld [smem:[#allocation15_spill]] (!%p568_p9)  ;;  %1636 = vset.pattern.permute.xlu1 (!%p568_p9), %v1732_v5  ;;  %1118 = vmatprep.mubr.f32.mxu1 (!%p568_p9), %v1730_v2  ;;  %s2493_s21 = sld [smem:[#allocation11_spill]] (!%p568_p9)  ;;  %v1737_v13 = vmov (!%p568_p9), 5   ;;  %v1738_v14 = vmov (!%p568_p9), 7   ;;  %v1739_v15 = vmov (!%p568_p9), 8   ;;  %v965_v23 = vld [vmem:[%s2441_s5] sm:$0xff] (!%p568_p9)  ;;  %v735_v37 = vlaneseq (!%p568_p9) }
  0x18   : > { %s2494_s23 = sld [smem:[#allocation13_spill]] (!%p568_p9)  ;;  %s2475_s2 = smov (!%p568_p9), 17   ;;  %vm1050_vm9 = vcmask (!%p568_p9), 588800   ;;  %vm1410_vm10 = vcmask (!%p568_p9), 15360   ;;  %vm1420_vm11 = vcmask (!%p568_p9), 8192  }
  0x19   : > { %s2471_s26 = smov (!%p568_p9), 1   ;;  %s2469_s30 = smov (!%p568_p9), 127   ;;  %v742_v40 = vshrl.u32 (!%p568_p9), %v735_v37, 7  ;;  %v1993_v42 = vand.u32 (!%p568_p9), 127, %v735_v37 }
  0x1a   : > { %s2465_s3 = smov (!%p568_p9), 112   ;;  %s2463_s27 = smov (!%p568_p9), 111  }
  0x1b   : > { %s2495_s0 = sld [smem:[#allocation12_spill]] (!%p568_p9)  ;;  %v1995_v43 = vsub.s32 (!%p568_p9), 0, %v742_v40  ;;  %v1997_v44 = vsub.s32 (!%p568_p9), 1, %v742_v40  ;;  %vm737_vm1 = vcmp.lt.s32.totalorder (!%p568_p9), %v1993_v42, 17  ;;  %vm757_vm2 = vcmp.lt.s32.totalorder (!%p568_p9), %v1993_v42, 16 }
  0x1c   : > { %v648_v1 = vld [vmem:[%s2491_s1] sm:$0xff] (!%p568_p9)  ;;  %vm777_vm3 = vcmp.lt.s32.totalorder (!%p568_p9), %v1993_v42, 15  ;;  %vm817_vm4 = vcmp.lt.s32.totalorder (!%p568_p9), %v1993_v42, 127  ;;  %vm797_vm5 = vcmp.lt.s32.totalorder (!%p568_p9), %v1993_v42, 1  ;;  %vm837_vm6 = vcmp.lt.s32.totalorder (!%p568_p9), %v1993_v42, 113 }
  0x1d   : > { %s626_s22 = scalar_select %p625_p10, %s1878_s13, 1  ;;  %651 = vperm.xlu0 %1635, %v648_v1   ;;  %v893_v4 = vld [vmem:[%s2492_s28] sm:$0xff]  ;;  %vm857_vm7 = vcmp.lt.s32.totalorder %v1993_v42, 112  ;;  %vm877_vm8 = vcmp.lt.s32.totalorder %v1993_v42, 111 }
  0x1e   : > { %902 = vperm.xlu1 %1636, %v893_v4   ;;  %v647_v8 = vld [vmem:[%s2494_s23] sm:$0xff]  ;;  %s2473_s23 = smov 15   ;;  %s2499_s28 = smov 111  }
  0x1f   : > { %s1560_s4 = sshll.u32 %s626_s22, 4  ;;  %s2467_s22 = smov 113  }
  0x20   : > { %s1918_s1 = scalar_lea.vmem %s2493_s21, %s1560_s4  ;;  %s2477_s4 = smov 16  }
  0x21   : > { %v631_v6 = vld [vmem:[%s1918_s1 + $0x8] sm:$0xff]  ;;  %v630_v7 = vld [vmem:[%s1918_s1] sm:$0xff]  ;;  %1638 = vset.pattern.permute.xlu0 %v1733_v9  ;;  %s2498_s21 = smov 112  }
  0x22   : > { %658 = vmatprep.subr.mxu0 %v631_v6  ;;  %918 = vperm.xlu0 %1638, %v893_v4   ;;  %v1545_v41 = vld [vmem:[%s2495_s0 + $0x1] ss:$8 sm:$0x3]  ;;  %v632_v46 = vld [vmem:[%s2495_s0] ss:$8 sm:$0x3] }
  0x23   : > { %659 = vmatpush1.msra.mxu0 %v630_v7  ;;  %1637 = vset.pattern.permute.xlu1 %v1734_v10  ;;  %v2007_v48 = vrot.slane %v1545_v41, %v1995_v43  ;;  %v2010_v49 = vrot.slane %v1545_v41, %v1997_v44  ;;  %v1546_v50 = vld [vmem:[%s2495_s0 + $0x2] ss:$8 sm:$0x3]  ;;  %v1548_v51 = vld [vmem:[%s2495_s0 + $0x5] ss:$8 sm:$0x3]  ;;  %v2019_v52 = vrot.slane %v632_v46, %v1995_v43 }
  0x24   : > { %1552 = vmatmul.mubr.msk.f32.vlgmr.msra.gmra.mrb[0].mxu0 %vm654_vm0, %v647_v8  ;;  %910 = vperm.xlu1 %1637, %v893_v4   ;;  %v2022_v53 = vrot.slane %v632_v46, %v1997_v44  ;;  %v2036_v61 = vrot.slane %v1546_v50, %v1995_v43  ;;  %v2039_v62 = vrot.slane %v1546_v50, %v1997_v44  ;;  %v1547_v63 = vld [vmem:[%s2495_s0 + $0x3] ss:$8 sm:$0x3]  ;;  %v1549_v37 = vld [vmem:[%s2495_s0 + $0x6] ss:$8 sm:$0x3] }
  0x25   : > { %1201 = vmatprep.mubr.f32.mxu0 %v1730_v2  ;;  %v2046_v0 = vrot.slane %v1548_v51, %v1995_v43  ;;  %v2049_v1 = vrot.slane %v1548_v51, %v1997_v44 }
  0x26   : > { %1639 = vset.pattern.permute.xlu0 %v1735_v11 }
  0x27   : > { %926 = vperm.xlu0 %1639, %v893_v4  }
  0x28   : > { %1641 = vset.pattern.permute.xlu1 %v1736_v12 }
  0x29   : > { %942 = vperm.xlu1 %1641, %v893_v4  }
  0x2b   : > { %1640 = vset.pattern.permute.xlu0 %v1737_v13 }
  0x2c   : > { %934 = vperm.xlu0 %1640, %v893_v4  }
  0x2d   : > { %1642 = vset.pattern.permute.xlu1 %v1738_v14 }
  0x2e   : > { %950 = vperm.xlu1 %1642, %v893_v4  }
  0x30   : > { %1643 = vset.pattern.permute.xlu0 %v1739_v15 }
  0x31   : > { %958 = vperm.xlu0 %1643, %v893_v4  }
  0x32   : > { %1645 = vset.pattern.permute.xlu1 %v1731_v3 }
  0x35   : > { %1644 = vset.pattern.permute.xlu0 %v1731_v3 }
  0x36   : > { %896 = vperm.xlu0 %1644, %v893_v4  }
  0x9c   : > { %v652_v16 = vpop.permute.xlu0 %651 }
  0x9d   : > { %v903_v24 = vpop.permute.xlu1 %902 }
  0xa1   : > { %v1974_v25 = vpop.permute.xlu0 %918 }
  0xa3   : > { %v1976_v26 = vpop.permute.xlu1 %910 }
  0xa6   : > { %v1978_v27 = vpop.permute.xlu0 %926 }
  0xa8   : > { %v1982_v29 = vpop.permute.xlu1 %942 }
  0xab   : > { %v1980_v28 = vpop.permute.xlu0 %934 }
  0xad   : > { %v1986_v31 = vpop.permute.xlu1 %950 }
  0xb0   : > { %v1984_v30 = vpop.permute.xlu0 %958 }
  0xb5   : > { %v897_v32 = vpop.permute.xlu0 %896 }
  0xf7   : > { %v724_v17 = vpop.f32.mrb[0].mxu0 }
  0xf8   : > { %v725_v18 = vadd.f32 %v724_v17, %v652_v16  ;;  %v726_v19 = vpop.f32.mrb[1].mxu0  ;;  %v2059_v17 = vrot.slane %v1547_v63, %v1995_v43 }
  0xf9   : > { %v727_v21 = vadd.f32 %v726_v19, %v652_v16 }
  0xfa   : > { %v1935_v20 = vmax.f32 %v725_v18, 0.0  ;;  %v2062_v18 = vrot.slane %v1547_v63, %v1997_v44 }
  0xfb   : > { %v1949_v22 = vmax.f32 %v727_v21, 0.0 }
  0xfc   : > { %773 = vrot.lane.b32.xlu1 %v1935_v20, %s2473_s23  ;;  %731 = vrot.lane.b32.xlu0 %v1935_v20, %s2475_s2 }
 0x100   : > { %793 = vrot.lane.b32.xlu1 %v1935_v20, %s2471_s26  ;;  %753 = vrot.lane.b32.xlu0 %v1935_v20, %s2477_s4 }
 0x104   : > { %813 = vrot.lane.b32.xlu1 %v1935_v20, %s2469_s30  ;;  %833 = vrot.lane.b32.xlu0 %v1935_v20, %s2467_s22 }
 0x108   : > { %853 = vrot.lane.b32.xlu1 %v1935_v20, %s2465_s3  ;;  %815 = vrot.lane.b32.xlu0 %v1949_v22, %s2469_s30  ;;  %s2502_s30 = smov 15  }
 0x10c   : > { %733 = vrot.lane.b32.xlu1 %v1949_v22, %s2475_s2  ;;  %873 = vrot.lane.b32.xlu0 %v1935_v20, %s2463_s27 }
 0x110   : > { %755 = vrot.lane.b32.xlu1 %v1949_v22, %s2477_s4  ;;  %968 = vperm.xlu0 %1644, %v965_v23  }
 0x114   : > { %775 = vrot.lane.b32.xlu1 %v1949_v22, %s2473_s23 }
 0x118   : > { %795 = vrot.lane.b32.xlu1 %v1949_v22, %s2471_s26 }
 0x11c   : > { %835 = vrot.lane.b32.xlu1 %v1949_v22, %s2467_s22  ;;  %s2503_s22 = smov 1  }
 0x120   : > { %855 = vrot.lane.b32.xlu1 %v1949_v22, %s2465_s3  ;;  %s2496_s3 = smov 127  }
 0x124   : > { %875 = vrot.lane.b32.xlu1 %v1949_v22, %s2463_s27  ;;  %s2497_s27 = smov 113  }
 0x16e   : > { %v774_v33 = vpop.permute.xlu1 %773  ;;  %v732_v35 = vpop.permute.xlu0 %731 }
 0x172   : > { %v794_v34 = vpop.permute.xlu1 %793  ;;  %v754_v38 = vpop.permute.xlu0 %753 }
 0x176   : > { %v814_v36 = vpop.permute.xlu1 %813  ;;  %v2002_v47 = vpop.permute.xlu0 %833 }
 0x17a   : > { %v1988_v39 = vpop.permute.xlu1 %853  ;;  %v816_v2 = vpop.permute.xlu0 %815 }
 0x17b   : > { %v819_v40 = vsel %vm817_vm4, %v816_v2, %v814_v36 }
 0x17e   : > { %v734_v45 = vpop.permute.xlu1 %733 }
 0x17f   : > { %v738_v55 = vsel %vm737_vm1, %v732_v35, %v734_v45  ;;  %v739_v56 = vsel %vm737_vm1, %v734_v45, %v732_v35 }
 0x180   : > { %v751_v4 = vmul.f32 %v2019_v52, %v739_v56  ;;  %v752_v6 = vmul.f32 %v2022_v53, %v738_v55  ;;  %v2083_v55 = vrot.slane %v1549_v37, %v1995_v43 }
 0x182   : > { %v756_v54 = vpop.permute.xlu1 %755  ;;  %v900_v41 = vmul.f32 %v897_v32, %v752_v6 }
 0x183   : > { %v758_v57 = vsel %vm757_vm2, %v754_v38, %v756_v54  ;;  %v759_v58 = vsel %vm757_vm2, %v756_v54, %v754_v38  ;;  %v929_v38 = vmul.f32 %v1978_v27, %v1935_v20 }
 0x184   : > { %v771_v59 = vmul.f32 %v2007_v48, %v759_v58  ;;  %v772_v60 = vmul.f32 %v2010_v49, %v758_v57 }
 0x186   : > { %v776_v7 = vpop.permute.xlu1 %775  ;;  %v905_v19 = vmul.f32 %v903_v24, %v771_v59  ;;  %v906_v21 = vmul.f32 %v903_v24, %v772_v60  ;;  %v899_v24 = vmul.f32 %v897_v32, %v751_v4  ;;  %v930_v59 = vmul.f32 %v1978_v27, %v1949_v22 }
 0x187   : > { %v778_v8 = vsel %vm777_vm3, %v774_v33, %v776_v7  ;;  %v779_v16 = vsel %vm777_vm3, %v776_v7, %v774_v33  ;;  %v818_v33 = vsel %vm817_vm4, %v814_v36, %v816_v2  ;;  %v2086_v36 = vrot.slane %v1549_v37, %v1997_v44 }
 0x188   : > { %v791_v23 = vmul.f32 %v2036_v61, %v779_v16  ;;  %v792_v35 = vmul.f32 %v2039_v62, %v778_v8  ;;  %v907_v56 = vadd.f32 %v905_v19, %v899_v24  ;;  %v908_v57 = vadd.f32 %v906_v21, %v900_v41  ;;  %v1551_v8 = vld [vmem:[%s2495_s0 + $0x10] ss:$8 sm:$0x3] }
 0x189   : > { %v832_v60 = vmul.f32 %v2049_v1, %v819_v40  ;;  %v2122_v40 = vrot.slane %v1551_v8, %v1997_v44 }
 0x18a   : > { %v913_v45 = vmul.f32 %v1976_v26, %v791_v23  ;;  %v914_v46 = vmul.f32 %v1976_v26, %v792_v35  ;;  %v796_v50 = vpop.permute.xlu1 %795  ;;  %v1550_v26 = vld [vmem:[%s2495_s0 + $0x7] ss:$8 sm:$0x3] }
 0x18b   : > { %v798_v51 = vsel %vm797_vm5, %v794_v34, %v796_v50  ;;  %v799_v54 = vsel %vm797_vm5, %v796_v50, %v794_v34  ;;  %v831_v34 = vmul.f32 %v2046_v0, %v818_v33  ;;  %v2110_v19 = vrot.slane %v1550_v26, %v1995_v43 }
 0x18c   : > { %v811_v32 = vmul.f32 %v2059_v17, %v799_v54  ;;  %v812_v58 = vmul.f32 %v2062_v18, %v798_v51  ;;  %v915_v63 = vadd.f32 %v913_v45, %v907_v56  ;;  %v916_v2 = vadd.f32 %v914_v46, %v908_v57 }
 0x18d   : > { %v2113_v21 = vrot.slane %v1550_v26, %v1997_v44  ;;  %v2119_v33 = vrot.slane %v1551_v8, %v1995_v43  ;;  %v938_v24 = vmul.f32 %v1980_v28, %v832_v60 }
 0x18e   : > { %v921_v4 = vmul.f32 %v1974_v25, %v811_v32  ;;  %v922_v6 = vmul.f32 %v1974_v25, %v812_v58  ;;  %v836_v7 = vpop.permute.xlu1 %835 }
 0x18f   : > { %v838_v27 = vsel %vm837_vm6, %v2002_v47, %v836_v7  ;;  %v839_v16 = vsel %vm837_vm6, %v836_v7, %v2002_v47  ;;  %v937_v47 = vmul.f32 %v1980_v28, %v831_v34 }
 0x190   : > { %v923_v25 = vadd.f32 %v921_v4, %v915_v63  ;;  %v924_v23 = vadd.f32 %v922_v6, %v916_v2  ;;  %v851_v35 = vmul.f32 %v2083_v55, %v838_v27  ;;  %v852_v37 = vmul.f32 %v2086_v36, %v839_v16 }
 0x192   : > { %v931_v41 = vadd.f32 %v929_v38, %v923_v25  ;;  %v932_v45 = vadd.f32 %v930_v59, %v924_v23  ;;  %v856_v46 = vpop.permute.xlu1 %855  ;;  %v945_v50 = vmul.f32 %v1982_v29, %v851_v35  ;;  %v946_v51 = vmul.f32 %v1982_v29, %v852_v37  ;;  %v874_v38 = vpop.permute.xlu0 %873 }
 0x193   : > { %v858_v54 = vsel %vm857_vm7, %v1988_v39, %v856_v46  ;;  %v859_v44 = vsel %vm857_vm7, %v856_v46, %v1988_v39 }
 0x194   : > { %v939_v56 = vadd.f32 %v937_v47, %v931_v41  ;;  %v940_v57 = vadd.f32 %v938_v24, %v932_v45  ;;  %v871_v32 = vmul.f32 %v2110_v19, %v858_v54  ;;  %v872_v28 = vmul.f32 %v2113_v21, %v859_v44 }
 0x196   : > { %v947_v58 = vadd.f32 %v945_v50, %v939_v56  ;;  %v948_v26 = vadd.f32 %v946_v51, %v940_v57  ;;  %v953_v59 = vmul.f32 %v1986_v31, %v871_v32  ;;  %v954_v29 = vmul.f32 %v1986_v31, %v872_v28  ;;  %v876_v34 = vpop.permute.xlu1 %875  ;;  %v969_v31 = vpop.permute.xlu0 %968 }
 0x197   : > { %v878_v60 = vsel %vm877_vm8, %v874_v38, %v876_v34  ;;  %v879_v39 = vsel %vm877_vm8, %v876_v34, %v874_v38 }
 0x198   : > { %v891_v63 = vmul.f32 %v2119_v33, %v878_v60  ;;  %v892_v2 = vmul.f32 %v2122_v40, %v879_v39  ;;  %v955_v4 = vadd.f32 %v953_v59, %v947_v58  ;;  %v956_v6 = vadd.f32 %v954_v29, %v948_v26 }
 0x19a   : > { %v961_v7 = vmul.f32 %v1984_v30, %v891_v63  ;;  %v962_v8 = vmul.f32 %v1984_v30, %v892_v2 }
 0x19c   : > { %v963_v27 = vadd.f32 %v961_v7, %v955_v4  ;;  %v964_v16 = vadd.f32 %v962_v8, %v956_v6 }
 0x19e   : > { %v971_v25 = vadd.f32 %v969_v31, %v963_v27  ;;  %v972_v23 = vadd.f32 %v969_v31, %v964_v16 }
 0x1a0   : > { %v973_v35 = vmax.f32 %v971_v25, 0.0  ;;  %v974_v37 = vmax.f32 %v972_v23, 0.0 }
 0x1a2   : > { %v975_v47 = vrot.slane %v973_v35, 4  ;;  %v976_v24 = vrot.slane %v974_v37, 4 }
 0x1a4   : > { %v2147_v41 = vadd.f32 %v975_v47, %v1935_v20  ;;  %v978_v30 = vadd.f32 %v976_v24, %v1949_v22  ;;  %v1044_v20 = vld [vmem:[%s2443_s7] sm:$0xff] }
 0x1a6   : > { %987 = vrot.lane.b32.xlu0 %v2147_v41, %s2477_s4  ;;  %979 = vrot.lane.b32.xlu1 %v2147_v41, %s2475_s2 }
 0x1aa   : > { %995 = vrot.lane.b32.xlu0 %v2147_v41, %s2473_s23  ;;  %981 = vrot.lane.b32.xlu1 %v978_v30, %s2475_s2 }
 0x1ae   : > { %1003 = vrot.lane.b32.xlu0 %v2147_v41, %s2471_s26  ;;  %989 = vrot.lane.b32.xlu1 %v978_v30, %s2477_s4  ;;  %s2501_s4 = smov 17  }
 0x1b2   : > { %1011 = vrot.lane.b32.xlu0 %v2147_v41, %s2496_s3  ;;  %997 = vrot.lane.b32.xlu1 %v978_v30, %s2473_s23 }
 0x1b6   : > { %1019 = vrot.lane.b32.xlu0 %v2147_v41, %s2497_s27  ;;  %1005 = vrot.lane.b32.xlu1 %v978_v30, %s2471_s26  ;;  %s2500_s26 = smov 16  }
 0x1ba   : > { %1027 = vrot.lane.b32.xlu0 %v2147_v41, %s2498_s21  ;;  %1013 = vrot.lane.b32.xlu1 %v978_v30, %s2496_s3 }
 0x1be   : > { %1035 = vrot.lane.b32.xlu0 %v2147_v41, %s2499_s28  ;;  %1021 = vrot.lane.b32.xlu1 %v978_v30, %s2497_s27 }
 0x1c2   : > { %1047 = vperm.xlu0 %1644, %v1044_v20   ;;  %1029 = vrot.lane.b32.xlu1 %v978_v30, %s2498_s21 }
 0x1c6   : > { %1037 = vrot.lane.b32.xlu1 %v978_v30, %s2499_s28  ;;  %1647 = vset.pattern.permute.xlu0 %v1734_v10 }
 0x218   : > { %v988_v22 = vpop.permute.xlu0 %987  ;;  %v980_v45 = vpop.permute.xlu1 %979 }
 0x21c   : > { %v996_v46 = vpop.permute.xlu0 %995  ;;  %v982_v50 = vpop.permute.xlu1 %981 }
 0x21d   : > { %v983_v51 = vsel %vm737_vm1, %v980_v45, %v982_v50  ;;  %v984_v54 = vsel %vm737_vm1, %v982_v50, %v980_v45 }
 0x21e   : > { %v985_v10 = vmul.f32 %v984_v54, %v2019_v52  ;;  %v986_v38 = vmul.f32 %v983_v51, %v2022_v53 }
 0x220   : > { %v1004_v44 = vpop.permute.xlu0 %1003  ;;  %v990_v56 = vpop.permute.xlu1 %989 }
 0x221   : > { %v991_v57 = vsel %vm757_vm2, %v988_v22, %v990_v56  ;;  %v992_v32 = vsel %vm757_vm2, %v990_v56, %v988_v22 }
 0x222   : > { %v993_v28 = vmul.f32 %v992_v32, %v2007_v48  ;;  %v994_v58 = vmul.f32 %v991_v57, %v2010_v49 }
 0x224   : > { %v998_v26 = vpop.permute.xlu1 %997  ;;  %v1562_v59 = vpack.c.bf16 %v994_v58, %v986_v38  ;;  %v1564_v29 = vpack.c.bf16 %v993_v28, %v985_v10  ;;  %v1012_v34 = vpop.permute.xlu0 %1011 }
 0x225   : > { %v999_v60 = vsel %vm777_vm3, %v996_v46, %v998_v26  ;;  %v1000_v39 = vsel %vm777_vm3, %v998_v26, %v996_v46 }
 0x226   : > { %1563 = vmatprep.subr.bf16.mxu1 %v1562_v59  ;;  %v1001_v6 = vmul.f32 %v1000_v39, %v2036_v61  ;;  %v1002_v7 = vmul.f32 %v999_v60, %v2039_v62  ;;  %v1043_v60 = vld [vmem:[%s2442_s6] sm:$0xff] }
 0x227   : > { %1565 = vmatpush1.bf16.msra.mxu1 %v1564_v29  ;;  %v1272_v39 = vld [vmem:[%s2446_s10] sm:$0xff] }
 0x228   : > { %v1006_v63 = vpop.permute.xlu1 %1005  ;;  %v1020_v16 = vpop.permute.xlu0 %1019  ;;  %1289 = vperm.xlu0 %1647, %v1272_v39  }
 0x229   : > { %v1007_v2 = vsel %vm797_vm5, %v1004_v44, %v1006_v63  ;;  %v1008_v4 = vsel %vm797_vm5, %v1006_v63, %v1004_v44  ;;  %v1128_v63 = vld [vmem:[%s2445_s9] sm:$0xff] }
 0x22a   : > { %v1009_v8 = vmul.f32 %v1008_v4, %v2059_v17  ;;  %v1010_v27 = vmul.f32 %v1007_v2, %v2062_v18  ;;  %1131 = vperm.xlu1 %1645, %v1128_v63  }
 0x22c   : > { %v1014_v31 = vpop.permute.xlu1 %1013  ;;  %v1566_v25 = vpack.c.bf16 %v1010_v27, %v1002_v7  ;;  %v1568_v23 = vpack.c.bf16 %v1009_v8, %v1001_v6  ;;  %v1028_v46 = vpop.permute.xlu0 %1027  ;;  %1648 = vset.pattern.permute.xlu0 %v1733_v9  ;;  %v1344_v27 = vld [vmem:[%s2447_s11] sm:$0xff] }
 0x22d   : > { %v1015_v35 = vsel %vm817_vm4, %v1012_v34, %v1014_v31  ;;  %v1016_v37 = vsel %vm817_vm4, %v1014_v31, %v1012_v34  ;;  %1297 = vperm.xlu0 %1648, %v1272_v39   ;;  %v1376_v31 = vld [vmem:[#allocation2] sm:$0x1] }
 0x22e   : > { %v1017_v47 = vmul.f32 %v1015_v35, %v2046_v0  ;;  %v1018_v24 = vmul.f32 %v1016_v37, %v2049_v1  ;;  %1567 = vmatprep.subr.bf16.mxu1 %v1566_v25  ;;  %1646 = vset.pattern.permute.xlu1 %v1732_v5 }
 0x22f   : > { %1569 = vmatpush1.bf16.msra.mxu1 %v1568_v23  ;;  %1281 = vperm.xlu1 %1646, %v1272_v39  }
 0x230   : > { %v1022_v20 = vpop.permute.xlu1 %1021  ;;  %v1570_v22 = vpack.c.bf16 %v1018_v24, %v978_v30  ;;  %v1572_v45 = vpack.c.bf16 %v1017_v47, %v2147_v41  ;;  %v1036_v10 = vpop.permute.xlu0 %1035 }
 0x231   : > { %v1023_v50 = vsel %vm837_vm6, %v1020_v16, %v1022_v20  ;;  %v1024_v51 = vsel %vm837_vm6, %v1022_v20, %v1020_v16  ;;  %1649 = vset.pattern.permute.xlu0 %v1735_v11  ;;  %v1356_v16 = vld [vmem:[%s2448_s12] sm:$0xff] }
 0x232   : > { %1571 = vmatprep.subr.bf16.mxu1 %v1570_v22  ;;  %v1025_v30 = vmul.f32 %v1023_v50, %v2083_v55  ;;  %v1026_v41 = vmul.f32 %v1024_v51, %v2086_v36  ;;  %1305 = vperm.xlu0 %1649, %v1272_v39  }
 0x233   : > { %1573 = vmatpush1.bf16.msra.mxu1 %v1572_v45  ;;  %1651 = vset.pattern.permute.xlu1 %v1736_v12 }
 0x234   : > { %v1030_v54 = vpop.permute.xlu1 %1029  ;;  %1321 = vperm.xlu1 %1651, %v1272_v39  }
 0x235   : > { %v1031_v44 = vsel %vm857_vm7, %v1028_v46, %v1030_v54  ;;  %v1032_v56 = vsel %vm857_vm7, %v1030_v54, %v1028_v46 }
 0x236   : > { %v1033_v57 = vmul.f32 %v1031_v44, %v2110_v19  ;;  %v1034_v32 = vmul.f32 %v1032_v56, %v2113_v21  ;;  %1650 = vset.pattern.permute.xlu0 %v1737_v13  ;;  %v1127_v13 = vld [vmem:[%s2444_s8] sm:$0xff] }
 0x237   : > { %1313 = vperm.xlu0 %1650, %v1272_v39  }
 0x238   : > { %v1038_v28 = vpop.permute.xlu1 %1037  ;;  %v1574_v38 = vpack.c.bf16 %v1034_v32, %v1026_v41  ;;  %v1576_v58 = vpack.c.bf16 %v1033_v57, %v1025_v30  ;;  %1652 = vset.pattern.permute.xlu1 %v1738_v14 }
 0x239   : > { %v1040_v26 = vsel %vm877_vm8, %v1038_v28, %v1036_v10  ;;  %v1039_v59 = vsel %vm877_vm8, %v1036_v10, %v1038_v28  ;;  %1329 = vperm.xlu1 %1652, %v1272_v39  }
 0x23a   : > { %v1042_v29 = vmul.f32 %v1040_v26, %v2122_v40  ;;  %1575 = vmatprep.subr.bf16.mxu1 %v1574_v38  ;;  %v1041_v34 = vmul.f32 %v1039_v59, %v2119_v33 }
 0x23b   : > { %1577 = vmatpush1.bf16.msra.mxu1 %v1576_v58  ;;  %1653 = vset.pattern.permute.xlu0 %v1739_v15 }
 0x23c   : > { %1070 = vmatprep.subr.mxu1 %v1042_v29  ;;  %1337 = vperm.xlu0 %1653, %v1272_v39  }
 0x23d   : > { %1655 = vset.pattern.permute.xlu1 %v1731_v3 }
 0x23f   : > { %1071 = vmatpush1.msra.mxu1 %v1041_v34 }
 0x240   : > { %1553 = vmatmul.mubr.msk.f32.vlgmr.msra.gmra.mrb[0].mxu1 %vm1050_vm9, %v1043_v60  ;;  %1654 = vset.pattern.permute.xlu0 %v1731_v3 }
 0x241   : > { %1275 = vperm.xlu0 %1654, %v1272_v39   ;;  %v1048_v5 = vpop.permute.xlu0 %1047 }
 0x2a7   : > { %v1290_v23 = vpop.permute.xlu0 %1289 }
 0x2a9   : > { %v1132_v14 = vpop.permute.xlu1 %1131 }
 0x2ac   : > { %v1298_v37 = vpop.permute.xlu0 %1297 }
 0x2ae   : > { %v1282_v25 = vpop.permute.xlu1 %1281 }
 0x2b1   : > { %v1306_v24 = vpop.permute.xlu0 %1305 }
 0x2b3   : > { %v2291_v35 = vpop.permute.xlu1 %1321 }
 0x2b6   : > { %v1314_v20 = vpop.permute.xlu0 %1313 }
 0x2b8   : > { %v2293_v47 = vpop.permute.xlu1 %1329 }
 0x2bb   : > { %v2295_v46 = vpop.permute.xlu0 %1337 }
 0x2c0   : > { %v1276_v51 = vpop.permute.xlu0 %1275 }
 0x313   : > { %v1120_v9 = vpop.f32.mrb[0].mxu1 }
 0x314   : > { %v1121_v11 = vadd.f32 %v1120_v9, %v1048_v5  ;;  %v1122_v12 = vpop.f32.mrb[1].mxu1 }
 0x315   : > { %v1123_v2 = vadd.f32 %v1122_v12, %v1048_v5 }
 0x316   : > { %v1125_v6 = vmax.f32 %v1121_v11, 0.0 }
 0x317   : > { %v1126_v4 = vmax.f32 %v1123_v2, 0.0 }
 0x319   : > { %1137 = vmatprep.subr.mxu0 %v1126_v4 }
 0x31a   : > { %1138 = vmatpush1.msra.mxu0 %v1125_v6 }
 0x31b   : > { %1554 = vmatmul.mubr.msk.f32.vlgmr.msra.gmra.mrb[2].mxu0 %vm654_vm0, %v1127_v13 }
 0x3ee   : > { %v1203_v15 = vpop.f32.mrb[2].mxu0 }
 0x3ef   : > { %v2249_v7 = vadd.f32 %v1203_v15, %v1132_v14  ;;  %v1205_v3 = vpop.f32.mrb[3].mxu0 }
 0x3f0   : > { %v2259_v8 = vadd.f32 %v1205_v3, %v1132_v14 }
 0x3f1   : > { %1216 = vrot.lane.b32.xlu0 %v2249_v7, %s2500_s26  ;;  %1208 = vrot.lane.b32.xlu1 %v2249_v7, %s2501_s4 }
 0x3f5   : > { %1248 = vrot.lane.b32.xlu0 %v2249_v7, %s2497_s27  ;;  %1224 = vrot.lane.b32.xlu1 %v2249_v7, %s2502_s30 }
 0x3f9   : > { %1242 = vrot.lane.b32.xlu0 %v2259_v8, %s2496_s3  ;;  %1232 = vrot.lane.b32.xlu1 %v2249_v7, %s2503_s22 }
 0x3fd   : > { %1264 = vrot.lane.b32.xlu0 %v2249_v7, %s2499_s28  ;;  %1240 = vrot.lane.b32.xlu1 %v2249_v7, %s2496_s3 }
 0x401   : > { %1256 = vrot.lane.b32.xlu1 %v2249_v7, %s2498_s21  ;;  %1347 = vperm.xlu0 %1654, %v1344_v27  }
 0x405   : > { %1210 = vrot.lane.b32.xlu1 %v2259_v8, %s2501_s4 }
 0x409   : > { %1218 = vrot.lane.b32.xlu1 %v2259_v8, %s2500_s26 }
 0x40d   : > { %1226 = vrot.lane.b32.xlu1 %v2259_v8, %s2502_s30  ;;  %s1561_s30 = sshll.u32 %s1878_s13, 8 }
 0x40e   : > { %s2394_s4 = scalar_lea.hbm %s2456_s20, %s1561_s30 }
 0x411   : > { %1234 = vrot.lane.b32.xlu1 %v2259_v8, %s2503_s22 }
 0x415   : > { %1250 = vrot.lane.b32.xlu1 %v2259_v8, %s2497_s27 }
 0x419   : > { %1258 = vrot.lane.b32.xlu1 %v2259_v8, %s2498_s21 }
 0x41d   : > { %1266 = vrot.lane.b32.xlu1 %v2259_v8, %s2499_s28  ;;  %s622_s28 = sand.u32 1, %s1720_s24  }
 0x41e   : > { %s1542_s26 = sshll.u32 %s622_s28, 4  ;;  %s1465_s13 = scalar_lea.sflag [#allocation4], %s622_s28 }
 0x41f   : > { %s624_s22 = scalar_lea.vmem [#allocation3], %s1542_s26 }
 0x420   : > { %s1479_s23 = sshll.u32 %s624_s22, 4  ;;  %s2396_s23 = int_to_ptr.vmem [resolvable:$true] %s1479_s23 }
 0x421   : > { %1359 = vperm.xlu1 %1655, %v1356_v16   ;;  %s1666_s27 = scalar_lea.vmem %s2396_s23, 256 }
 0x422   : > { %p1667_p11 = scmp.ne.s32.totalorder %s2396_s23, %s1666_s27 }
 0x424   : > { %p1668_p12 = pnand %p1667_p11, %p1895_p5 }
 0x425   : > { %1379 = vperm.xlu1 %1655, %v1376_v31  }
 0x426   : > { %p1669_p13 = pneg %p1668_p12 }
 0x463   : > { %v1209_v22 = vpop.permute.xlu1 %1208  ;;  %v1217_v56 = vpop.permute.xlu0 %1216 }
 0x467   : > { %v1225_v45 = vpop.permute.xlu1 %1224  ;;  %v1249_v41 = vpop.permute.xlu0 %1248 }
 0x46b   : > { %v1233_v50 = vpop.permute.xlu1 %1232  ;;  %v1243_v63 = vpop.permute.xlu0 %1242 }
 0x46f   : > { %v1241_v54 = vpop.permute.xlu1 %1240 }
 0x473   : > { %v1257_v44 = vpop.permute.xlu1 %1256 }
 0x477   : > { %v1211_v30 = vpop.permute.xlu1 %1210 }
 0x478   : > { %v1212_v32 = vsel %vm737_vm1, %v1209_v22, %v1211_v30  ;;  %v1213_v10 = vsel %vm737_vm1, %v1211_v30, %v1209_v22 }
 0x479   : > { %v1214_v59 = vmul.f32 %v1213_v10, %v2019_v52  ;;  %v1215_v29 = vmul.f32 %v1212_v32, %v2022_v53  ;;  %v1245_v52 = vsel %vm817_vm4, %v1243_v63, %v1241_v54 }
 0x47a   : > { %v1247_v16 = vmul.f32 %v1245_v52, %v2049_v1 }
 0x47b   : > { %v1219_v57 = vpop.permute.xlu1 %1218  ;;  %v1278_v53 = vmul.f32 %v1276_v51, %v1214_v59  ;;  %v1279_v12 = vmul.f32 %v1276_v51, %v1215_v29  ;;  %v1308_v51 = vmul.f32 %v1306_v24, %v2249_v7 }
 0x47c   : > { %v1220_v28 = vsel %vm757_vm2, %v1217_v56, %v1219_v57  ;;  %v1221_v38 = vsel %vm757_vm2, %v1219_v57, %v1217_v56  ;;  %v1317_v57 = vmul.f32 %v1314_v20, %v1247_v16 }
 0x47d   : > { %v1222_v58 = vmul.f32 %v1221_v38, %v2007_v48  ;;  %v1223_v26 = vmul.f32 %v1220_v28, %v2010_v49  ;;  %v1244_v49 = vsel %vm817_vm4, %v1241_v54, %v1243_v63  ;;  %v1309_v54 = vmul.f32 %v1306_v24, %v2259_v8 }
 0x47e   : > { %v1246_v27 = vmul.f32 %v1244_v49, %v2046_v0 }
 0x47f   : > { %v1227_v34 = vpop.permute.xlu1 %1226  ;;  %v1284_v5 = vmul.f32 %v1282_v25, %v1222_v58  ;;  %v1285_v9 = vmul.f32 %v1282_v25, %v1223_v26 }
 0x480   : > { %v1228_v60 = vsel %vm777_vm3, %v1225_v45, %v1227_v34  ;;  %v1229_v39 = vsel %vm777_vm3, %v1227_v34, %v1225_v45  ;;  %v1316_v30 = vmul.f32 %v1314_v20, %v1246_v27  ;;  %v1265_v20 = vpop.permute.xlu0 %1264 }
 0x481   : > { %v1230_v11 = vmul.f32 %v1229_v39, %v2036_v61  ;;  %v1231_v48 = vmul.f32 %v1228_v60, %v2039_v62  ;;  %v1286_v61 = vadd.f32 %v1284_v5, %v1278_v53  ;;  %v1287_v15 = vadd.f32 %v1285_v9, %v1279_v12 }
 0x483   : > { %v1292_v2 = vmul.f32 %v1290_v23, %v1230_v11  ;;  %v1293_v4 = vmul.f32 %v1290_v23, %v1231_v48  ;;  %v1235_v6 = vpop.permute.xlu1 %1234 }
 0x484   : > { %v1236_v13 = vsel %vm797_vm5, %v1233_v50, %v1235_v6  ;;  %v1237_v14 = vsel %vm797_vm5, %v1235_v6, %v1233_v50 }
 0x485   : > { %v1238_v62 = vmul.f32 %v1237_v14, %v2059_v17  ;;  %v1239_v3 = vmul.f32 %v1236_v13, %v2062_v18  ;;  %v1294_v31 = vadd.f32 %v1292_v2, %v1286_v61  ;;  %v1295_v25 = vadd.f32 %v1293_v4, %v1287_v15 }
 0x487   : > { %v1300_v23 = vmul.f32 %v1298_v37, %v1238_v62  ;;  %v1301_v22 = vmul.f32 %v1298_v37, %v1239_v3  ;;  %v1251_v45 = vpop.permute.xlu1 %1250 }
 0x488   : > { %v1252_v50 = vsel %vm837_vm6, %v1249_v41, %v1251_v45  ;;  %v1253_v17 = vsel %vm837_vm6, %v1251_v45, %v1249_v41 }
 0x489   : > { %v1302_v18 = vadd.f32 %v1300_v23, %v1294_v31  ;;  %v1303_v56 = vadd.f32 %v1301_v22, %v1295_v25  ;;  %v1254_v0 = vmul.f32 %v1252_v50, %v2083_v55  ;;  %v1255_v1 = vmul.f32 %v1253_v17, %v2086_v36 }
 0x48b   : > { %v1310_v37 = vadd.f32 %v1308_v51, %v1302_v18  ;;  %v1311_v32 = vadd.f32 %v1309_v54, %v1303_v56  ;;  %v1259_v10 = vpop.permute.xlu1 %1258  ;;  %v1324_v28 = vmul.f32 %v2291_v35, %v1254_v0  ;;  %v1325_v24 = vmul.f32 %v2291_v35, %v1255_v1 }
 0x48c   : > { %v1260_v38 = vsel %vm857_vm7, %v1257_v44, %v1259_v10  ;;  %v1261_v41 = vsel %vm857_vm7, %v1259_v10, %v1257_v44 }
 0x48d   : > { %v1318_v58 = vadd.f32 %v1316_v30, %v1310_v37  ;;  %v1319_v26 = vadd.f32 %v1317_v57, %v1311_v32  ;;  %v1262_v55 = vmul.f32 %v1260_v38, %v2110_v19  ;;  %v1263_v36 = vmul.f32 %v1261_v41, %v2113_v21  ;;  %v1408_v41 = vld [vmem:[%s2450_s14] sm:$0xff] }
 0x48f   : > { %v1326_v59 = vadd.f32 %v1324_v28, %v1318_v58  ;;  %v1327_v29 = vadd.f32 %v1325_v24, %v1319_v26  ;;  %v1332_v34 = vmul.f32 %v2293_v47, %v1262_v55  ;;  %v1333_v60 = vmul.f32 %v2293_v47, %v1263_v36  ;;  %v1267_v35 = vpop.permute.xlu1 %1266  ;;  %v1348_v47 = vpop.permute.xlu0 %1347 }
 0x490   : > { %v1268_v39 = vsel %vm877_vm8, %v1265_v20, %v1267_v35  ;;  %v1269_v44 = vsel %vm877_vm8, %v1267_v35, %v1265_v20 }
 0x491   : > { %v1270_v63 = vmul.f32 %v1268_v39, %v2119_v33  ;;  %v1271_v19 = vmul.f32 %v1269_v44, %v2122_v40  ;;  %v1334_v5 = vadd.f32 %v1332_v34, %v1326_v59  ;;  %v1335_v21 = vadd.f32 %v1333_v60, %v1327_v29  ;;  %v1418_v60 = vld [vmem:[%s2451_s15] sm:$0x1] }
 0x493   : > { %v1340_v9 = vmul.f32 %v2295_v46, %v1270_v63  ;;  %v1341_v11 = vmul.f32 %v2295_v46, %v1271_v19 }
 0x495   : > { %v1342_v48 = vadd.f32 %v1340_v9, %v1334_v5  ;;  %v1343_v49 = vadd.f32 %v1341_v11, %v1335_v21 }
 0x497   : > { %v1350_v52 = vadd.f32 %v1348_v47, %v1342_v48  ;;  %v1351_v53 = vadd.f32 %v1348_v47, %v1343_v49 }
 0x499   : > { %v1352_v12 = vrot.slane %v1350_v52, 4  ;;  %v1353_v2 = vrot.slane %v1351_v53, 4  ;;  %v1435_v52 = vld [vmem:[%s2452_s16] sm:$0x1] }
 0x49b   : > { %v2354_v42 = vadd.f32 %v1352_v12, %v2249_v7  ;;  %v2357_v33 = vadd.f32 %v1353_v2, %v2259_v8  ;;  %v1437_v12 = vld [vmem:[%s2453_s17] sm:$0x1] }
 0x4a0   : > { %v1360_v40 = vpop.permute.xlu1 %1359 }
 0x4a1   : > { %v1362_v4 = vmul.f32 %v1360_v40, %v2354_v42  ;;  %v1363_v6 = vmul.f32 %v1360_v40, %v2357_v33 }
 0x4a3   : > { %v1364_v13 = vrot.slane %v1362_v4, 4  ;;  %v1370_v46 = vrot.slane %v1363_v6, 4 }
 0x4a4   : > { %v1380_v16 = vpop.permute.xlu1 %1379 }
 0x4a5   : > { %v1365_v14 = vadd.f32 %v1364_v13, %v1362_v4  ;;  %v1371_v61 = vadd.f32 %v1370_v46, %v1363_v6  ;;  %v1385_v8 = vrot.slane %v1380_v16, %v1995_v43  ;;  %v1440_v6 = vld [vmem:[%s2454_s18] sm:$0xff] }
 0x4a6   : > { %v1664_v16 = vld [vmem:[%s1918_s1] sm:$0xff] }
 0x4a7   : > { %v1366_v15 = vrot.slane %v1365_v14, 2  ;;  %v1372_v62 = vrot.slane %v1371_v61, 2 }
 0x4a9   : > { %v1367_v3 = vadd.f32 %v1366_v15, %v1365_v14  ;;  %v1373_v27 = vadd.f32 %v1372_v62, %v1371_v61  ;;  %v1449_v61 = vld [vmem:[%s2455_s19] sm:$0xff] }
 0x4ab   : > { %v1368_v31 = vrot.slane %v1367_v3, 1  ;;  %v1374_v7 = vrot.slane %v1373_v27, 1 }
 0x4ad   : > { %v1369_v25 = vadd.f32 %v1368_v31, %v1367_v3  ;;  %v1375_v23 = vadd.f32 %v1374_v7, %v1373_v27  ;;  %v1665_v7 = vld [vmem:[%s1918_s1 + $0x8] sm:$0xff]  ;;  %s1748_s1 = smov [#allocation3]  }
 0x4ae   : > { %s1670_s21 = sshll.u32 %s1748_s1, 4  ;;  %s1671_s21 = int_to_ptr.vmem [resolvable:$false] %s1670_s21 }
 0x4af   : > { %v1386_v22 = vadd.f32 %v1385_v8, %v1369_v25  ;;  %v1387_v45 = vadd.f32 %v1385_v8, %v1375_v23  ;;  %s1672_s26 = scalar_lea.vmem %s1671_s21, 512  ;;  %p1673_p0 = scmp.lt.s32.totalorder %s2396_s23, %s1671_s21 }
 0x4b0   : > { %p1674_p1 = scmp.lt.s32.totalorder %s1672_s26, %s1666_s27 }
 0x4b1   : > { %v1388_v51 = vmax.f32 %v1386_v22, %v1387_v45 }
 0x4b2   : > { %p1675_p2 = por %p1674_p1, %p1673_p0 }
 0x4b3   : > { %1389 = vmax.xlane.f32.xlu0 %v1388_v51 }
 0x4b4   : > { %p1676_p3 = pnand %p1675_p2, %p1669_p13 }
 0x540   : > { %v1390_v54 = vpop.xlane.xlu0 %1389 }
 0x541   : > { %v1391_v50 = vsub.f32 %v1386_v22, %v1390_v54  ;;  %v1392_v17 = vsub.f32 %v1387_v45, %v1390_v54 }
 0x543   : > { %v1393_v18 = vmul.f32 1.442695, %v1391_v50  ;;  %v1395_v56 = vmul.f32 1.442695, %v1392_v17 }
 0x545   : > { %1656 = vpow2.f32 %v1393_v18 }
 0x546   : > { %1658 = vpow2.f32 %v1395_v56 }
 0x54f   : > { %v1657_v0 = vpop.eup %1656 }
 0x550   : > { %v1659_v1 = vpop.eup %1658 }
 0x551   : > { %v1397_v30 = vadd.f32 %v1659_v1, %v1657_v0 }
 0x553   : > { %1398 = vadd.xlane.f32.xlu1 %v1397_v30 }
 0x5e0   : > { %v1399_v57 = vpop.xlane.xlu1 %1398 }
 0x5e1   : > { %1660 = vrcp.f32 %v1399_v57 }
 0x5eb   : > { %v1661_v37 = vpop.eup %1660 }
 0x5ec   : > { %v1401_v32 = vmul.f32 %v1661_v37, %v1657_v0  ;;  %v1402_v10 = vmul.f32 %v1661_v37, %v1659_v1 }
 0x5ee   : > { %v1403_v28 = vmul.f32 %v1401_v32, %v2354_v42  ;;  %v1404_v24 = vmul.f32 %v1402_v10, %v2357_v33 }
 0x5f0   : > { %v1405_v38 = vadd.f32 %v1404_v24, %v1403_v28 }
 0x5f2   : > { %1406 = vadd.xlane.f32.xlu0 %v1405_v38 }
 0x67f   : > { %v1407_v58 = vpop.xlane.xlu0 %1406 }
 0x680   : > { %v1409_v26 = vmul.f32 %v1408_v41, %v1407_v58 }
 0x682   : > { %v1411_v55 = vsel %vm1410_vm10, %v1409_v26, 0.0 }
 0x683   : > { %v1412_v36 = vrot.slane %v1411_v55, 4 }
 0x685   : > { %v1413_v20 = vadd.f32 %v1412_v36, %v1411_v55 }
 0x687   : > { %v1414_v59 = vrot.slane %v1413_v20, 2 }
 0x689   : > { %v1415_v29 = vadd.f32 %v1414_v59, %v1413_v20 }
 0x68b   : > { %v1416_v34 = vrot.slane %v1415_v29, 1 }
 0x68d   : > { %v1417_v35 = vadd.f32 %v1416_v34, %v1415_v29 }
 0x68f   : > { %v1419_v39 = vadd.f32 %v1418_v60, %v1417_v35 }
 0x691   : > { %v1421_v44 = vsel %vm1420_vm11, %v1419_v39, 0.0 }
 0x692   : > { %1422 = vadd.xlane.f32.xlu0 %v1421_v44 }
 0x71f   : > { %v1423_v63 = vpop.xlane.xlu0 %1422 }
 0x720   : > { %v1425_v19 = vmul.f32 0.5, %v1423_v63 }
 0x722   : > { %v1426_v5 = vsub.f32 %v1419_v39, %v1425_v19 }
 0x724   : > { %v1427_v21 = vmul.f32 %v1426_v5, %v1426_v5 }
 0x726   : > { %v1428_v9 = vsel %vm1420_vm11, %v1427_v21, 0.0 }
 0x727   : > { %1429 = vadd.xlane.f32.xlu1 %v1428_v9 }
 0x7b4   : > { %v1430_v11 = vpop.xlane.xlu1 %1429 }
 0x7b5   : > { %v1431_v48 = vmul.f32 0.5, %v1430_v11 }
 0x7b7   : > { %v1432_v49 = vadd.f32 1e-05, %v1431_v48 }
 0x7b9   : > { %1662 = vrsqrt.f32 %v1432_v49 }
 0x7c3   : > { %v1663_v47 = vpop.eup %1662 }
 0x7c4   : > { %v1434_v53 = vmul.f32 %v1663_v47, %v1426_v5 }
 0x7c6   : > { %v1436_v2 = vmul.f32 %v1435_v52, %v1434_v53 }
 0x7c8   : > { %v1438_v40 = vadd.f32 %v1437_v12, %v1436_v2 }
 0x7ca   : > { %v1439_v4 = vmax.f32 %v1438_v40, 0.0 }
 0x7cc   : > { %v1444_v13 = vrot.slane %v1439_v4, %v1995_v43 }
 0x7ce   : > { %v1445_v46 = vmul.f32 %v1444_v13, %v1440_v6 }
 0x7d0   : > { %v1446_v14 = vsel %vm1410_vm10, %v1445_v46, 0.0 }
 0x7d1   : > { %1447 = vadd.xlane.f32.xlu0 %v1446_v14 }
 0x85e   : > { %v1448_v15 = vpop.xlane.xlu0 %1447 }
 0x85f   : > { %v1450_v62 = vadd.f32 %v1449_v61, %v1448_v15 }
 0x861   : > { %1453 = vperm.xlu1 %1655, %v1450_v62  }
 0x8e0   : > { %v1454_v3 = vpop.permute.xlu1 %1453 }
 0x8e1   : > { %v1456_v27 = vadd.f32 %v1454_v3, %v2354_v42  ;;  %v1457_v43 = vadd.f32 %v1454_v3, %v2357_v33 }
 0x8e3   : > { %v1458_v31 = vadd.f32 %v1664_v16, %v1456_v27  ;;  %v1459_v25 = vadd.f32 %v1665_v7, %v1457_v43 }
 0x8e5   : > { %v1460_v23 = vmax.f32 %v1458_v31, 0.0  ;;  %v1461_v8 = vmax.f32 %v1459_v25, 0.0 }
 0x8e7   : > { %1462 = vst [vmem:[%s624_s22] sm:$0xff] %v1460_v23  ;;  %1463 = vst [vmem:[%s624_s22 + $0x8] sm:$0xff] %v1461_v8 }
 0x8e8   : > { %1679 = shalt.err (!%p1676_p3)
}
 0x8e9   : > { %s1680_s28 = scalar_lea.hbm %s2394_s4, 256  ;;  %s1684_s2 = scalar_lea.hbm %s2456_s20, 512 }
 0x8ea   : > { %p1681_p4 = scmp.ne.s32.totalorder %s2394_s4, %s1680_s28  ;;  %p1685_p9 = scmp.lt.u32.totalorder %s2394_s4, %s2456_s20 }
 0x8eb   : > { %p1686_p10 = scmp.lt.u32.totalorder %s1684_s2, %s1680_s28  ;;  %p1688_p12 = scmp.lt.u32.totalorder %s1680_s28, %s2394_s4 }
 0x8ec   : > { %p1682_p7 = pnand %p1681_p4, %p1895_p5 }
 0x8ed   : > { %p1687_p11 = por %p1686_p10, %p1685_p9 }
 0x8ee   : > { %p1683_p8 = pneg %p1682_p7 }
 0x8ef   : > { %p1689_p13 = por %p1688_p12, %p1687_p11 }
 0x8f1   : > { %p1690_p0 = pnand %p1689_p13, %p1683_p8 }
 0x8f3   : > { %1693 = shalt.err (!%p1690_p0)
}
 0x8f4   : > { %1578 = dma.vmem_to_hbm [thread:$0]  (%p1895_p5), %s2396_s23, 256, %s2394_s4, %s1465_s13  }
 0x8f5 PF: > { %s2504_s27 = sld [smem:[#allocation6_spill]]  ;;  %p1584_p1 = scmp.ge.s32.totalorder %s1728_s25, 2 }
 0x8f7   : > { %p1581_p2 = pnand %p1584_p1, %p1899_p6 }
 0x8fb   : > { %s1491_s26 = sand.u32 1, %s2504_s27  }
 0x8fc   : > { %s1492_s30 = scalar_lea.sflag [#allocation4], %s1491_s26 }
 0x8fd   : > { %1711 = dma.done.wait (!%p1581_p2), %s1492_s30, 256  }
 0x8fe   : > { %1713 = vsyncadd (!%p1581_p2), %s1492_s30, 4294967040  ;;  %s2506_s25 = sld [smem:[#allocation8_spill]]  ;;  %s2507_s28 = sld [smem:[#allocation7_spill]] }
 0x8ff   : > { %s2508_s2 = sld [smem:[#allocation9_spill]]  ;;  %s2509_s23 = smov %s1720_s24 }
 0x904   : > { %p32_p3 = scmp.ge.s32.totalorder %s2506_s25, 4   ;;  %s2510_s24 = smov %s2507_s28 }
 0x906   :  { %34 = sbr.rel (!%p32_p3) target bundleno = 9 (0x9), region = 142 }
 0x90d   :  { %1497 = vsyncpa [#allocation4], 1 }
 0x90e   :  { %1499 = vsyncpa [#allocation4 + $0x1], 1 }

</bundles_post_ra>
